<compile_context>
chip_gen: v7x
topology: tpu7x:2x2x1
jax: 0.10.0
libtpu: 0.0.40
codegen_flags: <defaults>
</compile_context>

<pallas_src>
import math
from functools import partial

import jax
import jax.numpy as jnp
from jax import lax
from jax.experimental import pallas as pl
from jax.experimental.pallas import tpu as pltpu

# ---- model configuration (small, consistent with the module) ----------------
N_TOKEN = 20      # amino-acid vocab
D_MODEL = 32
N_HEAD = 4
D_HID = 64
N_LAYERS = 2
LN_EPS = 1e-5
EMB_PAD = 32      # vocab padded to 32 so the one-hot matmul has K = 32
V_PAD = 128       # decoder vocab padded to one full lane tile (unmasked stores)
NEG_BIAS = -1e30  # masked attention bias (exp underflows to 0 -> no NaN risk)

# ---- packed weight-slab row offsets ------------------------------------------
W_EMB = 0                                   # emb_scaled  rows [0:32),  lanes [0:32)
W_DEC = EMB_PAD                             # decoder W   rows [32:64), lanes [0:128)
W_L0 = EMB_PAD + D_MODEL                    # first layer block starts at row 64
W_PER_LAYER = 32 + 32 + 32 + 64             # wqkv | wo | w1 | w2 row blocks
W_ROWS = W_L0 + N_LAYERS * W_PER_LAYER      # 384

# ---- packed bias/LN-slab row offsets -----------------------------------------
P_DEC = 0                                   # decoder bias
P_L0 = 1
P_PER_LAYER = 8                             # bqkv, bo, b1, b2, g1, be1, g2, be2
P_ROWS = 24                                 # 1 + 2*8 = 17, padded to sublane multiple


# ---- fused Pallas kernel ------------------------------------------------------
def fused_transformer_kernel(const_ref, w_ref, p_ref, o_ref, *, n_head):
    B, S, Vp = o_ref.shape
    BS = B * S
    D = D_MODEL
    H = D_HID
    hd = D // n_head
    scale = 1.0 / math.sqrt(hd)
    inv_d = 1.0 / D

    # ---- unpack the constants slab (single DMA'd input) ----------------------
    onehot = const_ref[0:BS, 0:EMB_PAD]                      # [BS, 32]
    pe = const_ref[BS:2 * BS, 0:D]                           # [BS, 32]
    bias_rep = const_ref[2 * BS:(2 + n_head) * BS, 0:BS]     # [n_head*BS, BS]

    # ---- embedding gather (sqrt(d_model) pre-folded into table) + pos-enc ----
    emb = w_ref[W_EMB:W_EMB + EMB_PAD, 0:D]                  # [32, 32]
    x = jnp.dot(onehot, emb, preferred_element_type=jnp.float32) + pe   # [BS, D]

    # per-head lane-selection masks (layer-invariant, hoisted out of the loop)
    lane = lax.broadcasted_iota(jnp.int32, (1, D), 1)
    head_masks = [((lane >= h * hd) & (lane < (h + 1) * hd)).astype(jnp.float32)
                  for h in range(n_head)]

    # ---- encoder layers (post-norm, dropout = identity) -----------------------
    for l in range(N_LAYERS):
        wb = W_L0 + l * W_PER_LAYER
        pb = P_L0 + l * P_PER_LAYER
        wqkv = w_ref[wb:wb + 32, :]                          # [D, 128] fused q|k|v
        wo = w_ref[wb + 32:wb + 64, 0:D]                     # [D, D]
        w1 = w_ref[wb + 64:wb + 96, 0:H]                     # [D, H]
        w2 = w_ref[wb + 96:wb + 160, 0:D]                    # [H, D]
        bqkv = p_ref[pb + 0:pb + 1, :]                       # [1, 128]
        bo = p_ref[pb + 1:pb + 2, 0:D]
        b1 = p_ref[pb + 2:pb + 3, 0:H]
        b2 = p_ref[pb + 3:pb + 4, 0:D]
        g1 = p_ref[pb + 4:pb + 5, 0:D]
        be1 = p_ref[pb + 5:pb + 6, 0:D]
        g2 = p_ref[pb + 6:pb + 7, 0:D]
        be2 = p_ref[pb + 7:pb + 8, 0:D]

        # fused Q|K|V projection: ONE MXU push per layer
        qkv = jnp.dot(x, wqkv, preferred_element_type=jnp.float32) + bqkv   # [BS, 128]
        q = qkv[:, 0:D]
        k = qkv[:, D:2 * D]
        v = qkv[:, 2 * D:3 * D]

        # sublane-stacked heads: ONE score matmul, ONE softmax, ONE PV matmul
        qs = jnp.concatenate([q * hm for hm in head_masks], axis=0)        # [n_head*BS, D]
        s = jnp.einsum('qd,kd->qk', qs, k,
                       preferred_element_type=jnp.float32) * scale          # [n_head*BS, BS]
        s = s + bias_rep                                                     # causal+batch mask
        m = jnp.max(s, axis=-1, keepdims=True)                               # diag is finite
        e = jnp.exp(s - m)
        p = e * pl.reciprocal(jnp.sum(e, axis=-1, keepdims=True), approx=True)
        ctx = jnp.dot(p, v, preferred_element_type=jnp.float32)             # [n_head*BS, D]
        # collapse head blocks back into their own lanes (no concat of outputs)
        attn = head_masks[0] * ctx[0:BS, :]
        for h in range(1, n_head):
            attn = attn + head_masks[h] * ctx[h * BS:(h + 1) * BS, :]       # [BS, D]

        attn = jnp.dot(attn, wo, preferred_element_type=jnp.float32) + bo

        # residual + LayerNorm 1
        h1 = x + attn
        mu1 = jnp.sum(h1, axis=-1, keepdims=True) * inv_d
        c1 = h1 - mu1
        var1 = jnp.sum(c1 * c1, axis=-1, keepdims=True) * inv_d
        h1n = c1 * lax.rsqrt(var1 + LN_EPS) * g1 + be1

        # feed-forward: Linear -> ReLU -> Linear
        ff = jnp.maximum(jnp.dot(h1n, w1, preferred_element_type=jnp.float32) + b1, 0.0)
        ff = jnp.dot(ff, w2, preferred_element_type=jnp.float32) + b2

        # residual + LayerNorm 2
        h2 = h1n + ff
        mu2 = jnp.sum(h2, axis=-1, keepdims=True) * inv_d
        c2 = h2 - mu2
        var2 = jnp.sum(c2 * c2, axis=-1, keepdims=True) * inv_d
        x = c2 * lax.rsqrt(var2 + LN_EPS) * g2 + be2

    # ---- decoder Linear (lane-dense, vocab padded to 128) + softmax ----------
    # nn.Softmax() with no `dim` on the 3-D [S, B, V] tensor uses dim=0, i.e.
    # the SEQUENCE axis.  Done for both batch slabs at once; exact divide.
    wd = w_ref[W_DEC:W_DEC + D, :]                           # [D, 128]
    bd = p_ref[P_DEC:P_DEC + 1, :]                           # [1, 128]
    logits = jnp.dot(x, wd, preferred_element_type=jnp.float32) + bd         # [BS, 128]
    lg = logits.reshape(B, S, Vp)
    mx = jnp.max(lg, axis=1, keepdims=True)
    ex = jnp.exp(lg - mx)
    o_ref[...] = ex / jnp.sum(ex, axis=1, keepdims=True)


# ---- wrappers ------------------------------------------------------------------
def positional_encoding(seq_len, d_model):
    pos = jnp.arange(seq_len, dtype=jnp.float32)[:, None]
    div = jnp.exp(jnp.arange(0, d_model, 2, dtype=jnp.float32)
                  * (-math.log(10000.0) / d_model))
    pe = jnp.zeros((seq_len, d_model), jnp.float32)
    pe = pe.at[:, 0::2].set(jnp.sin(pos * div))
    pe = pe.at[:, 1::2].set(jnp.cos(pos * div))
    return pe


def init_params(key):
    """Deterministic synthetic parameters, packed into two VMEM slabs.

    Weights are stored [in, out] (transpose of PyTorch's [out, in]).  Linear
    biases and LayerNorm betas are zero; LayerNorm gammas are one.
    """
    key, k_emb, k_dec = jax.random.split(key, 3)
    emb = jax.random.normal(k_emb, (N_TOKEN, D_MODEL), jnp.float32) * 0.02
    wd = jax.random.normal(k_dec, (D_MODEL, N_TOKEN), jnp.float32) * 0.02

    w = jnp.zeros((W_ROWS, 128), jnp.float32)
    # embedding with sqrt(d_model) folded in (saves an in-kernel scale)
    w = w.at[W_EMB:W_EMB + N_TOKEN, 0:D_MODEL].set(emb * math.sqrt(D_MODEL))
    w = w.at[W_DEC:W_DEC + D_MODEL, 0:N_TOKEN].set(wd)

    p = jnp.zeros((P_ROWS, 128), jnp.float32)

    for l in range(N_LAYERS):
        key, k1, k2, k3, k4, k5, k6 = jax.random.split(key, 7)
        wq = jax.random.normal(k1, (D_MODEL, D_MODEL), jnp.float32) * 0.02
        wk = jax.random.normal(k2, (D_MODEL, D_MODEL), jnp.float32) * 0.02
        wv = jax.random.normal(k3, (D_MODEL, D_MODEL), jnp.float32) * 0.02
        wo = jax.random.normal(k4, (D_MODEL, D_MODEL), jnp.float32) * 0.02
        w1 = jax.random.normal(k5, (D_MODEL, D_HID), jnp.float32) * 0.02
        w2 = jax.random.normal(k6, (D_HID, D_MODEL), jnp.float32) * 0.02
        wb = W_L0 + l * W_PER_LAYER
        w = w.at[wb:wb + 32, 0:32].set(wq)       # q lanes
        w = w.at[wb:wb + 32, 32:64].set(wk)      # k lanes
        w = w.at[wb:wb + 32, 64:96].set(wv)      # v lanes
        w = w.at[wb + 32:wb + 64, 0:32].set(wo)
        w = w.at[wb + 64:wb + 96, 0:64].set(w1)
        w = w.at[wb + 96:wb + 160, 0:32].set(w2)
        pb = P_L0 + l * P_PER_LAYER
        p = p.at[pb + 4, 0:D_MODEL].set(1.0)     # LayerNorm1 gamma
        p = p.at[pb + 6, 0:D_MODEL].set(1.0)     # LayerNorm2 gamma
    return {"w": w, "p": p}


def transformer_forward(tokens, params):
    B, S = tokens.shape
    BS = B * S
    const_rows = (2 + N_HEAD) * BS

    # ---- constants slab: one-hot | positional encoding | head-tiled mask -----
    onehot = jax.nn.one_hot(tokens.reshape(BS), EMB_PAD, dtype=jnp.float32)   # [BS, 32]
    pe = jnp.tile(positional_encoding(S, D_MODEL), (B, 1))                    # [BS, 32]
    # block-diagonal over batch (rows are b-major) x causal within each block
    r = jnp.arange(BS, dtype=jnp.int32)
    same_batch = (r[:, None] // S) == (r[None, :] // S)
    causal = (r[None, :] % S) <= (r[:, None] % S)
    bias = jnp.where(same_batch & causal, 0.0, NEG_BIAS).astype(jnp.float32)  # [BS, BS]
    bias_rep = jnp.tile(bias, (N_HEAD, 1))                                    # [H*BS, BS]

    const = jnp.zeros((const_rows, 128), jnp.float32)
    const = const.at[0:BS, 0:EMB_PAD].set(onehot)
    const = const.at[BS:2 * BS, 0:D_MODEL].set(pe)
    const = const.at[2 * BS:const_rows, 0:BS].set(bias_rep)

    # NOTE: gridless single call (3 input DMAs total).  For larger batches on
    # v7x, add a leading batch grid axis with dimension_semantics=("parallel",).
    out = pl.pallas_call(
        partial(fused_transformer_kernel, n_head=N_HEAD),
        out_shape=jax.ShapeDtypeStruct((B, S, V_PAD), jnp.float32),
        in_specs=[pl.BlockSpec(memory_space=pltpu.MemorySpace.VMEM)] * 3,
        out_specs=pl.BlockSpec(memory_space=pltpu.MemorySpace.VMEM),
    )(const, params["w"], params["p"])
    # slice the lane-dense padded vocab back to the real 20 tokens
    return out[:, :, :N_TOKEN]


if __name__ == "__main__":
    key = jax.random.PRNGKey(0)
    kp, kt = jax.random.split(key)
    params = init_params(kp)
    B, S = 2, 8
    tokens = jax.random.randint(kt, (B, S), 0, N_TOKEN, dtype=jnp.int32)

    out = jax.jit(transformer_forward)(tokens, params)
    out = jax.block_until_ready(out)

    assert out.shape == (B, S, N_TOKEN), out.shape
    assert bool(jnp.all(jnp.isfinite(out)))
    # sequence-axis softmax (exact divide) => each (batch, token) column sums to 1
    assert bool(jnp.allclose(out.sum(axis=1), 1.0, atol=1e-3))
    print("KERNEL_OK")
</pallas_src>

<mosaic_0001>
module attributes {stable_mosaic.version = 11 : i64} {
  func.func @fused_transformer_kernel(%arg0: memref<96x128xf32, #tpu.memory_space<vmem>>, %arg1: memref<384x128xf32, #tpu.memory_space<vmem>>, %arg2: memref<24x128xf32, #tpu.memory_space<vmem>>, %arg3: memref<2x8x128xf32, #tpu.memory_space<vmem>>) attributes {dimension_semantics = [], scalar_prefetch = 0 : i64, scratch_operands = 0 : i64, tpu.core_type = #tpu.core_type<tc>} {
    %c0 = arith.constant 0 : index
    %c0_0 = arith.constant 0 : index
    %0 = vector.load %arg0[%c0, %c0_0] : memref<96x128xf32, #tpu.memory_space<vmem>>, vector<16x32xf32>
    %c16 = arith.constant 16 : index
    %c0_1 = arith.constant 0 : index
    %1 = vector.load %arg0[%c16, %c0_1] : memref<96x128xf32, #tpu.memory_space<vmem>>, vector<16x32xf32>
    %c32 = arith.constant 32 : index
    %c0_2 = arith.constant 0 : index
    %2 = vector.load %arg0[%c32, %c0_2] : memref<96x128xf32, #tpu.memory_space<vmem>>, vector<64x16xf32>
    %c0_3 = arith.constant 0 : index
    %c0_4 = arith.constant 0 : index
    %3 = vector.load %arg1[%c0_3, %c0_4] : memref<384x128xf32, #tpu.memory_space<vmem>>, vector<32x32xf32>
    %cst = arith.constant dense<0.000000e+00> : vector<16x32xf32>
    %4 = tpu.matmul %0, %3, %cst {dimension_numbers = #tpu.dot_dimension_numbers<[1], [0], [0], [1], [0, 0, 1, 1], [], []>} : vector<16x32xf32>, vector<32x32xf32>, vector<16x32xf32> -> vector<16x32xf32>
    %5 = arith.addf %4, %1 : vector<16x32xf32>
    %6 = tpu.iota {dimensions = array<i32: 1>} : vector<1x32xi32>
    %c0_i32 = arith.constant 0 : i32
    %7 = vector.broadcast %c0_i32 : i32 to vector<1x32xi32>
    %8 = arith.cmpi sge, %6, %7 : vector<1x32xi32>
    %c8_i32 = arith.constant 8 : i32
    %9 = vector.broadcast %c8_i32 : i32 to vector<1x32xi32>
    %10 = arith.cmpi slt, %6, %9 : vector<1x32xi32>
    %11 = arith.andi %8, %10 : vector<1x32xi1>
    %12 = arith.extui %11 : vector<1x32xi1> to vector<1x32xi32>
    %13 = arith.sitofp %12 : vector<1x32xi32> to vector<1x32xf32>
    %c8_i32_5 = arith.constant 8 : i32
    %14 = vector.broadcast %c8_i32_5 : i32 to vector<1x32xi32>
    %15 = arith.cmpi sge, %6, %14 : vector<1x32xi32>
    %c16_i32 = arith.constant 16 : i32
    %16 = vector.broadcast %c16_i32 : i32 to vector<1x32xi32>
    %17 = arith.cmpi slt, %6, %16 : vector<1x32xi32>
    %18 = arith.andi %15, %17 : vector<1x32xi1>
    %19 = arith.extui %18 : vector<1x32xi1> to vector<1x32xi32>
    %20 = arith.sitofp %19 : vector<1x32xi32> to vector<1x32xf32>
    %c16_i32_6 = arith.constant 16 : i32
    %21 = vector.broadcast %c16_i32_6 : i32 to vector<1x32xi32>
    %22 = arith.cmpi sge, %6, %21 : vector<1x32xi32>
    %c24_i32 = arith.constant 24 : i32
    %23 = vector.broadcast %c24_i32 : i32 to vector<1x32xi32>
    %24 = arith.cmpi slt, %6, %23 : vector<1x32xi32>
    %25 = arith.andi %22, %24 : vector<1x32xi1>
    %26 = arith.extui %25 : vector<1x32xi1> to vector<1x32xi32>
    %27 = arith.sitofp %26 : vector<1x32xi32> to vector<1x32xf32>
    %c24_i32_7 = arith.constant 24 : i32
    %28 = vector.broadcast %c24_i32_7 : i32 to vector<1x32xi32>
    %29 = arith.cmpi sge, %6, %28 : vector<1x32xi32>
    %c32_i32 = arith.constant 32 : i32
    %30 = vector.broadcast %c32_i32 : i32 to vector<1x32xi32>
    %31 = arith.cmpi slt, %6, %30 : vector<1x32xi32>
    %32 = arith.andi %29, %31 : vector<1x32xi1>
    %33 = arith.extui %32 : vector<1x32xi1> to vector<1x32xi32>
    %34 = arith.sitofp %33 : vector<1x32xi32> to vector<1x32xf32>
    %c64 = arith.constant 64 : index
    %c0_8 = arith.constant 0 : index
    %35 = vector.load %arg1[%c64, %c0_8] : memref<384x128xf32, #tpu.memory_space<vmem>>, vector<32x128xf32>
    %c96 = arith.constant 96 : index
    %c0_9 = arith.constant 0 : index
    %36 = vector.load %arg1[%c96, %c0_9] : memref<384x128xf32, #tpu.memory_space<vmem>>, vector<32x32xf32>
    %c128 = arith.constant 128 : index
    %c0_10 = arith.constant 0 : index
    %37 = vector.load %arg1[%c128, %c0_10] : memref<384x128xf32, #tpu.memory_space<vmem>>, vector<32x64xf32>
    %c160 = arith.constant 160 : index
    %c0_11 = arith.constant 0 : index
    %38 = vector.load %arg1[%c160, %c0_11] : memref<384x128xf32, #tpu.memory_space<vmem>>, vector<64x32xf32>
    %c1 = arith.constant 1 : index
    %c0_12 = arith.constant 0 : index
    %39 = vector.load %arg2[%c1, %c0_12] : memref<24x128xf32, #tpu.memory_space<vmem>>, vector<1x128xf32>
    %c2 = arith.constant 2 : index
    %c0_13 = arith.constant 0 : index
    %40 = vector.load %arg2[%c2, %c0_13] : memref<24x128xf32, #tpu.memory_space<vmem>>, vector<1x32xf32>
    %c3 = arith.constant 3 : index
    %c0_14 = arith.constant 0 : index
    %41 = vector.load %arg2[%c3, %c0_14] : memref<24x128xf32, #tpu.memory_space<vmem>>, vector<1x64xf32>
    %c4 = arith.constant 4 : index
    %c0_15 = arith.constant 0 : index
    %42 = vector.load %arg2[%c4, %c0_15] : memref<24x128xf32, #tpu.memory_space<vmem>>, vector<1x32xf32>
    %c5 = arith.constant 5 : index
    %c0_16 = arith.constant 0 : index
    %43 = vector.load %arg2[%c5, %c0_16] : memref<24x128xf32, #tpu.memory_space<vmem>>, vector<1x32xf32>
    %c6 = arith.constant 6 : index
    %c0_17 = arith.constant 0 : index
    %44 = vector.load %arg2[%c6, %c0_17] : memref<24x128xf32, #tpu.memory_space<vmem>>, vector<1x32xf32>
    %c7 = arith.constant 7 : index
    %c0_18 = arith.constant 0 : index
    %45 = vector.load %arg2[%c7, %c0_18] : memref<24x128xf32, #tpu.memory_space<vmem>>, vector<1x32xf32>
    %c8 = arith.constant 8 : index
    %c0_19 = arith.constant 0 : index
    %46 = vector.load %arg2[%c8, %c0_19] : memref<24x128xf32, #tpu.memory_space<vmem>>, vector<1x32xf32>
    %cst_20 = arith.constant dense<0.000000e+00> : vector<16x128xf32>
    %47 = tpu.matmul %5, %35, %cst_20 {dimension_numbers = #tpu.dot_dimension_numbers<[1], [0], [0], [1], [0, 0, 1, 1], [], []>} : vector<16x32xf32>, vector<32x128xf32>, vector<16x128xf32> -> vector<16x128xf32>
    %48 = vector.broadcast %39 : vector<1x128xf32> to vector<16x128xf32>
    %49 = arith.addf %47, %48 : vector<16x128xf32>
    %50 = vector.extract_strided_slice %49 {offsets = [0, 0], sizes = [16, 32], strides = [1, 1]} : vector<16x128xf32> to vector<16x32xf32>
    %51 = vector.extract_strided_slice %49 {offsets = [0, 32], sizes = [16, 32], strides = [1, 1]} : vector<16x128xf32> to vector<16x32xf32>
    %52 = vector.extract_strided_slice %49 {offsets = [0, 64], sizes = [16, 32], strides = [1, 1]} : vector<16x128xf32> to vector<16x32xf32>
    %53 = vector.broadcast %13 : vector<1x32xf32> to vector<16x32xf32>
    %54 = arith.mulf %50, %53 : vector<16x32xf32>
    %55 = vector.broadcast %20 : vector<1x32xf32> to vector<16x32xf32>
    %56 = arith.mulf %50, %55 : vector<16x32xf32>
    %57 = vector.broadcast %27 : vector<1x32xf32> to vector<16x32xf32>
    %58 = arith.mulf %50, %57 : vector<16x32xf32>
    %59 = vector.broadcast %34 : vector<1x32xf32> to vector<16x32xf32>
    %60 = arith.mulf %50, %59 : vector<16x32xf32>
    %61 = tpu.concatenate %54, %56, %58, %60 in 0 : vector<16x32xf32>, vector<16x32xf32>, vector<16x32xf32>, vector<16x32xf32> -> vector<64x32xf32>
    "tpu.trace_start"() <{level = 10 : i32, message = "qd,kd->qk"}> : () -> ()
    %cst_21 = arith.constant dense<0.000000e+00> : vector<64x16xf32>
    %62 = tpu.matmul %61, %51, %cst_21 {dimension_numbers = #tpu.dot_dimension_numbers<[1], [1], [0], [0], [0, 0, 1, 0], [], []>} : vector<64x32xf32>, vector<16x32xf32>, vector<64x16xf32> -> vector<64x16xf32>
    "tpu.trace_stop"() : () -> ()
    %cst_22 = arith.constant 0.353553385 : f32
    %63 = vector.broadcast %cst_22 : f32 to vector<64x16xf32>
    %64 = arith.mulf %62, %63 : vector<64x16xf32>
    %65 = arith.addf %64, %2 : vector<64x16xf32>
    %cst_23 = arith.constant dense<0xFF800000> : vector<64xf32>
    %66 = vector.multi_reduction <maximumf>, %65, %cst_23 [1] : vector<64x16xf32> to vector<64xf32>
    %67 = vector.shape_cast %66 : vector<64xf32> to vector<64x1xf32>
    %68 = vector.broadcast %67 : vector<64x1xf32> to vector<64x16xf32>
    %69 = arith.subf %65, %68 : vector<64x16xf32>
    %70 = math.exp %69 : vector<64x16xf32>
    %cst_24 = arith.constant dense<0.000000e+00> : vector<64xf32>
    %71 = vector.multi_reduction <add>, %70, %cst_24 [1] : vector<64x16xf32> to vector<64xf32>
    %72 = vector.shape_cast %71 : vector<64xf32> to vector<64x1xf32>
    %73 = tpu.reciprocal %72 {approx = true} : vector<64x1xf32> -> vector<64x1xf32>
    %74 = vector.broadcast %73 : vector<64x1xf32> to vector<64x16xf32>
    %75 = arith.mulf %70, %74 : vector<64x16xf32>
    %cst_25 = arith.constant dense<0.000000e+00> : vector<64x32xf32>
    %76 = tpu.matmul %75, %52, %cst_25 {dimension_numbers = #tpu.dot_dimension_numbers<[1], [0], [0], [1], [0, 0, 1, 1], [], []>} : vector<64x16xf32>, vector<16x32xf32>, vector<64x32xf32> -> vector<64x32xf32>
    %77 = vector.extract_strided_slice %76 {offsets = [0, 0], sizes = [16, 32], strides = [1, 1]} : vector<64x32xf32> to vector<16x32xf32>
    %78 = vector.broadcast %13 : vector<1x32xf32> to vector<16x32xf32>
    %79 = arith.mulf %78, %77 : vector<16x32xf32>
    %80 = vector.extract_strided_slice %76 {offsets = [16, 0], sizes = [16, 32], strides = [1, 1]} : vector<64x32xf32> to vector<16x32xf32>
    %81 = vector.broadcast %20 : vector<1x32xf32> to vector<16x32xf32>
    %82 = arith.mulf %81, %80 : vector<16x32xf32>
    %83 = arith.addf %79, %82 : vector<16x32xf32>
    %84 = vector.extract_strided_slice %76 {offsets = [32, 0], sizes = [16, 32], strides = [1, 1]} : vector<64x32xf32> to vector<16x32xf32>
    %85 = vector.broadcast %27 : vector<1x32xf32> to vector<16x32xf32>
    %86 = arith.mulf %85, %84 : vector<16x32xf32>
    %87 = arith.addf %83, %86 : vector<16x32xf32>
    %88 = vector.extract_strided_slice %76 {offsets = [48, 0], sizes = [16, 32], strides = [1, 1]} : vector<64x32xf32> to vector<16x32xf32>
    %89 = vector.broadcast %34 : vector<1x32xf32> to vector<16x32xf32>
    %90 = arith.mulf %89, %88 : vector<16x32xf32>
    %91 = arith.addf %87, %90 : vector<16x32xf32>
    %cst_26 = arith.constant dense<0.000000e+00> : vector<16x32xf32>
    %92 = tpu.matmul %91, %36, %cst_26 {dimension_numbers = #tpu.dot_dimension_numbers<[1], [0], [0], [1], [0, 0, 1, 1], [], []>} : vector<16x32xf32>, vector<32x32xf32>, vector<16x32xf32> -> vector<16x32xf32>
    %93 = vector.broadcast %40 : vector<1x32xf32> to vector<16x32xf32>
    %94 = arith.addf %92, %93 : vector<16x32xf32>
    %95 = arith.addf %5, %94 : vector<16x32xf32>
    %cst_27 = arith.constant dense<0.000000e+00> : vector<16xf32>
    %96 = vector.multi_reduction <add>, %95, %cst_27 [1] : vector<16x32xf32> to vector<16xf32>
    %97 = vector.shape_cast %96 : vector<16xf32> to vector<16x1xf32>
    %cst_28 = arith.constant 3.125000e-02 : f32
    %98 = vector.broadcast %cst_28 : f32 to vector<16x1xf32>
    %99 = arith.mulf %97, %98 : vector<16x1xf32>
    %100 = vector.broadcast %99 : vector<16x1xf32> to vector<16x32xf32>
    %101 = arith.subf %95, %100 : vector<16x32xf32>
    %102 = arith.mulf %101, %101 : vector<16x32xf32>
    %cst_29 = arith.constant dense<0.000000e+00> : vector<16xf32>
    %103 = vector.multi_reduction <add>, %102, %cst_29 [1] : vector<16x32xf32> to vector<16xf32>
    %104 = vector.shape_cast %103 : vector<16xf32> to vector<16x1xf32>
    %cst_30 = arith.constant 3.125000e-02 : f32
    %105 = vector.broadcast %cst_30 : f32 to vector<16x1xf32>
    %106 = arith.mulf %104, %105 : vector<16x1xf32>
    %cst_31 = arith.constant 9.99999974E-6 : f32
    %107 = vector.broadcast %cst_31 : f32 to vector<16x1xf32>
    %108 = arith.addf %106, %107 : vector<16x1xf32>
    %109 = math.rsqrt %108 : vector<16x1xf32>
    %110 = vector.broadcast %109 : vector<16x1xf32> to vector<16x32xf32>
    %111 = arith.mulf %101, %110 : vector<16x32xf32>
    %112 = vector.broadcast %43 : vector<1x32xf32> to vector<16x32xf32>
    %113 = arith.mulf %111, %112 : vector<16x32xf32>
    %114 = vector.broadcast %44 : vector<1x32xf32> to vector<16x32xf32>
    %115 = arith.addf %113, %114 : vector<16x32xf32>
    %cst_32 = arith.constant dense<0.000000e+00> : vector<16x64xf32>
    %116 = tpu.matmul %115, %37, %cst_32 {dimension_numbers = #tpu.dot_dimension_numbers<[1], [0], [0], [1], [0, 0, 1, 1], [], []>} : vector<16x32xf32>, vector<32x64xf32>, vector<16x64xf32> -> vector<16x64xf32>
    %117 = vector.broadcast %41 : vector<1x64xf32> to vector<16x64xf32>
    %118 = arith.addf %116, %117 : vector<16x64xf32>
    %cst_33 = arith.constant 0.000000e+00 : f32
    %119 = vector.broadcast %cst_33 : f32 to vector<16x64xf32>
    %120 = arith.maximumf %118, %119 : vector<16x64xf32>
    %cst_34 = arith.constant dense<0.000000e+00> : vector<16x32xf32>
    %121 = tpu.matmul %120, %38, %cst_34 {dimension_numbers = #tpu.dot_dimension_numbers<[1], [0], [0], [1], [0, 0, 1, 1], [], []>} : vector<16x64xf32>, vector<64x32xf32>, vector<16x32xf32> -> vector<16x32xf32>
    %122 = vector.broadcast %42 : vector<1x32xf32> to vector<16x32xf32>
    %123 = arith.addf %121, %122 : vector<16x32xf32>
    %124 = arith.addf %115, %123 : vector<16x32xf32>
    %cst_35 = arith.constant dense<0.000000e+00> : vector<16xf32>
    %125 = vector.multi_reduction <add>, %124, %cst_35 [1] : vector<16x32xf32> to vector<16xf32>
    %126 = vector.shape_cast %125 : vector<16xf32> to vector<16x1xf32>
    %cst_36 = arith.constant 3.125000e-02 : f32
    %127 = vector.broadcast %cst_36 : f32 to vector<16x1xf32>
    %128 = arith.mulf %126, %127 : vector<16x1xf32>
    %129 = vector.broadcast %128 : vector<16x1xf32> to vector<16x32xf32>
    %130 = arith.subf %124, %129 : vector<16x32xf32>
    %131 = arith.mulf %130, %130 : vector<16x32xf32>
    %cst_37 = arith.constant dense<0.000000e+00> : vector<16xf32>
    %132 = vector.multi_reduction <add>, %131, %cst_37 [1] : vector<16x32xf32> to vector<16xf32>
    %133 = vector.shape_cast %132 : vector<16xf32> to vector<16x1xf32>
    %cst_38 = arith.constant 3.125000e-02 : f32
    %134 = vector.broadcast %cst_38 : f32 to vector<16x1xf32>
    %135 = arith.mulf %133, %134 : vector<16x1xf32>
    %cst_39 = arith.constant 9.99999974E-6 : f32
    %136 = vector.broadcast %cst_39 : f32 to vector<16x1xf32>
    %137 = arith.addf %135, %136 : vector<16x1xf32>
    %138 = math.rsqrt %137 : vector<16x1xf32>
    %139 = vector.broadcast %138 : vector<16x1xf32> to vector<16x32xf32>
    %140 = arith.mulf %130, %139 : vector<16x32xf32>
    %141 = vector.broadcast %45 : vector<1x32xf32> to vector<16x32xf32>
    %142 = arith.mulf %140, %141 : vector<16x32xf32>
    %143 = vector.broadcast %46 : vector<1x32xf32> to vector<16x32xf32>
    %144 = arith.addf %142, %143 : vector<16x32xf32>
    %c224 = arith.constant 224 : index
    %c0_40 = arith.constant 0 : index
    %145 = vector.load %arg1[%c224, %c0_40] : memref<384x128xf32, #tpu.memory_space<vmem>>, vector<32x128xf32>
    %c256 = arith.constant 256 : index
    %c0_41 = arith.constant 0 : index
    %146 = vector.load %arg1[%c256, %c0_41] : memref<384x128xf32, #tpu.memory_space<vmem>>, vector<32x32xf32>
    %c288 = arith.constant 288 : index
    %c0_42 = arith.constant 0 : index
    %147 = vector.load %arg1[%c288, %c0_42] : memref<384x128xf32, #tpu.memory_space<vmem>>, vector<32x64xf32>
    %c320 = arith.constant 320 : index
    %c0_43 = arith.constant 0 : index
    %148 = vector.load %arg1[%c320, %c0_43] : memref<384x128xf32, #tpu.memory_space<vmem>>, vector<64x32xf32>
    %c9 = arith.constant 9 : index
    %c0_44 = arith.constant 0 : index
    %149 = vector.load %arg2[%c9, %c0_44] : memref<24x128xf32, #tpu.memory_space<vmem>>, vector<1x128xf32>
    %c10 = arith.constant 10 : index
    %c0_45 = arith.constant 0 : index
    %150 = vector.load %arg2[%c10, %c0_45] : memref<24x128xf32, #tpu.memory_space<vmem>>, vector<1x32xf32>
    %c11 = arith.constant 11 : index
    %c0_46 = arith.constant 0 : index
    %151 = vector.load %arg2[%c11, %c0_46] : memref<24x128xf32, #tpu.memory_space<vmem>>, vector<1x64xf32>
    %c12 = arith.constant 12 : index
    %c0_47 = arith.constant 0 : index
    %152 = vector.load %arg2[%c12, %c0_47] : memref<24x128xf32, #tpu.memory_space<vmem>>, vector<1x32xf32>
    %c13 = arith.constant 13 : index
    %c0_48 = arith.constant 0 : index
    %153 = vector.load %arg2[%c13, %c0_48] : memref<24x128xf32, #tpu.memory_space<vmem>>, vector<1x32xf32>
    %c14 = arith.constant 14 : index
    %c0_49 = arith.constant 0 : index
    %154 = vector.load %arg2[%c14, %c0_49] : memref<24x128xf32, #tpu.memory_space<vmem>>, vector<1x32xf32>
    %c15 = arith.constant 15 : index
    %c0_50 = arith.constant 0 : index
    %155 = vector.load %arg2[%c15, %c0_50] : memref<24x128xf32, #tpu.memory_space<vmem>>, vector<1x32xf32>
    %c16_51 = arith.constant 16 : index
    %c0_52 = arith.constant 0 : index
    %156 = vector.load %arg2[%c16_51, %c0_52] : memref<24x128xf32, #tpu.memory_space<vmem>>, vector<1x32xf32>
    %cst_53 = arith.constant dense<0.000000e+00> : vector<16x128xf32>
    %157 = tpu.matmul %144, %145, %cst_53 {dimension_numbers = #tpu.dot_dimension_numbers<[1], [0], [0], [1], [0, 0, 1, 1], [], []>} : vector<16x32xf32>, vector<32x128xf32>, vector<16x128xf32> -> vector<16x128xf32>
    %158 = vector.broadcast %149 : vector<1x128xf32> to vector<16x128xf32>
    %159 = arith.addf %157, %158 : vector<16x128xf32>
    %160 = vector.extract_strided_slice %159 {offsets = [0, 0], sizes = [16, 32], strides = [1, 1]} : vector<16x128xf32> to vector<16x32xf32>
    %161 = vector.extract_strided_slice %159 {offsets = [0, 32], sizes = [16, 32], strides = [1, 1]} : vector<16x128xf32> to vector<16x32xf32>
    %162 = vector.extract_strided_slice %159 {offsets = [0, 64], sizes = [16, 32], strides = [1, 1]} : vector<16x128xf32> to vector<16x32xf32>
    %163 = vector.broadcast %13 : vector<1x32xf32> to vector<16x32xf32>
    %164 = arith.mulf %160, %163 : vector<16x32xf32>
    %165 = vector.broadcast %20 : vector<1x32xf32> to vector<16x32xf32>
    %166 = arith.mulf %160, %165 : vector<16x32xf32>
    %167 = vector.broadcast %27 : vector<1x32xf32> to vector<16x32xf32>
    %168 = arith.mulf %160, %167 : vector<16x32xf32>
    %169 = vector.broadcast %34 : vector<1x32xf32> to vector<16x32xf32>
    %170 = arith.mulf %160, %169 : vector<16x32xf32>
    %171 = tpu.concatenate %164, %166, %168, %170 in 0 : vector<16x32xf32>, vector<16x32xf32>, vector<16x32xf32>, vector<16x32xf32> -> vector<64x32xf32>
    "tpu.trace_start"() <{level = 10 : i32, message = "qd,kd->qk"}> : () -> ()
    %cst_54 = arith.constant dense<0.000000e+00> : vector<64x16xf32>
    %172 = tpu.matmul %171, %161, %cst_54 {dimension_numbers = #tpu.dot_dimension_numbers<[1], [1], [0], [0], [0, 0, 1, 0], [], []>} : vector<64x32xf32>, vector<16x32xf32>, vector<64x16xf32> -> vector<64x16xf32>
    "tpu.trace_stop"() : () -> ()
    %cst_55 = arith.constant 0.353553385 : f32
    %173 = vector.broadcast %cst_55 : f32 to vector<64x16xf32>
    %174 = arith.mulf %172, %173 : vector<64x16xf32>
    %175 = arith.addf %174, %2 : vector<64x16xf32>
    %cst_56 = arith.constant dense<0xFF800000> : vector<64xf32>
    %176 = vector.multi_reduction <maximumf>, %175, %cst_56 [1] : vector<64x16xf32> to vector<64xf32>
    %177 = vector.shape_cast %176 : vector<64xf32> to vector<64x1xf32>
    %178 = vector.broadcast %177 : vector<64x1xf32> to vector<64x16xf32>
    %179 = arith.subf %175, %178 : vector<64x16xf32>
    %180 = math.exp %179 : vector<64x16xf32>
    %cst_57 = arith.constant dense<0.000000e+00> : vector<64xf32>
    %181 = vector.multi_reduction <add>, %180, %cst_57 [1] : vector<64x16xf32> to vector<64xf32>
    %182 = vector.shape_cast %181 : vector<64xf32> to vector<64x1xf32>
    %183 = tpu.reciprocal %182 {approx = true} : vector<64x1xf32> -> vector<64x1xf32>
    %184 = vector.broadcast %183 : vector<64x1xf32> to vector<64x16xf32>
    %185 = arith.mulf %180, %184 : vector<64x16xf32>
    %cst_58 = arith.constant dense<0.000000e+00> : vector<64x32xf32>
    %186 = tpu.matmul %185, %162, %cst_58 {dimension_numbers = #tpu.dot_dimension_numbers<[1], [0], [0], [1], [0, 0, 1, 1], [], []>} : vector<64x16xf32>, vector<16x32xf32>, vector<64x32xf32> -> vector<64x32xf32>
    %187 = vector.extract_strided_slice %186 {offsets = [0, 0], sizes = [16, 32], strides = [1, 1]} : vector<64x32xf32> to vector<16x32xf32>
    %188 = vector.broadcast %13 : vector<1x32xf32> to vector<16x32xf32>
    %189 = arith.mulf %188, %187 : vector<16x32xf32>
    %190 = vector.extract_strided_slice %186 {offsets = [16, 0], sizes = [16, 32], strides = [1, 1]} : vector<64x32xf32> to vector<16x32xf32>
    %191 = vector.broadcast %20 : vector<1x32xf32> to vector<16x32xf32>
    %192 = arith.mulf %191, %190 : vector<16x32xf32>
    %193 = arith.addf %189, %192 : vector<16x32xf32>
    %194 = vector.extract_strided_slice %186 {offsets = [32, 0], sizes = [16, 32], strides = [1, 1]} : vector<64x32xf32> to vector<16x32xf32>
    %195 = vector.broadcast %27 : vector<1x32xf32> to vector<16x32xf32>
    %196 = arith.mulf %195, %194 : vector<16x32xf32>
    %197 = arith.addf %193, %196 : vector<16x32xf32>
    %198 = vector.extract_strided_slice %186 {offsets = [48, 0], sizes = [16, 32], strides = [1, 1]} : vector<64x32xf32> to vector<16x32xf32>
    %199 = vector.broadcast %34 : vector<1x32xf32> to vector<16x32xf32>
    %200 = arith.mulf %199, %198 : vector<16x32xf32>
    %201 = arith.addf %197, %200 : vector<16x32xf32>
    %cst_59 = arith.constant dense<0.000000e+00> : vector<16x32xf32>
    %202 = tpu.matmul %201, %146, %cst_59 {dimension_numbers = #tpu.dot_dimension_numbers<[1], [0], [0], [1], [0, 0, 1, 1], [], []>} : vector<16x32xf32>, vector<32x32xf32>, vector<16x32xf32> -> vector<16x32xf32>
    %203 = vector.broadcast %150 : vector<1x32xf32> to vector<16x32xf32>
    %204 = arith.addf %202, %203 : vector<16x32xf32>
    %205 = arith.addf %144, %204 : vector<16x32xf32>
    %cst_60 = arith.constant dense<0.000000e+00> : vector<16xf32>
    %206 = vector.multi_reduction <add>, %205, %cst_60 [1] : vector<16x32xf32> to vector<16xf32>
    %207 = vector.shape_cast %206 : vector<16xf32> to vector<16x1xf32>
    %cst_61 = arith.constant 3.125000e-02 : f32
    %208 = vector.broadcast %cst_61 : f32 to vector<16x1xf32>
    %209 = arith.mulf %207, %208 : vector<16x1xf32>
    %210 = vector.broadcast %209 : vector<16x1xf32> to vector<16x32xf32>
    %211 = arith.subf %205, %210 : vector<16x32xf32>
    %212 = arith.mulf %211, %211 : vector<16x32xf32>
    %cst_62 = arith.constant dense<0.000000e+00> : vector<16xf32>
    %213 = vector.multi_reduction <add>, %212, %cst_62 [1] : vector<16x32xf32> to vector<16xf32>
    %214 = vector.shape_cast %213 : vector<16xf32> to vector<16x1xf32>
    %cst_63 = arith.constant 3.125000e-02 : f32
    %215 = vector.broadcast %cst_63 : f32 to vector<16x1xf32>
    %216 = arith.mulf %214, %215 : vector<16x1xf32>
    %cst_64 = arith.constant 9.99999974E-6 : f32
    %217 = vector.broadcast %cst_64 : f32 to vector<16x1xf32>
    %218 = arith.addf %216, %217 : vector<16x1xf32>
    %219 = math.rsqrt %218 : vector<16x1xf32>
    %220 = vector.broadcast %219 : vector<16x1xf32> to vector<16x32xf32>
    %221 = arith.mulf %211, %220 : vector<16x32xf32>
    %222 = vector.broadcast %153 : vector<1x32xf32> to vector<16x32xf32>
    %223 = arith.mulf %221, %222 : vector<16x32xf32>
    %224 = vector.broadcast %154 : vector<1x32xf32> to vector<16x32xf32>
    %225 = arith.addf %223, %224 : vector<16x32xf32>
    %cst_65 = arith.constant dense<0.000000e+00> : vector<16x64xf32>
    %226 = tpu.matmul %225, %147, %cst_65 {dimension_numbers = #tpu.dot_dimension_numbers<[1], [0], [0], [1], [0, 0, 1, 1], [], []>} : vector<16x32xf32>, vector<32x64xf32>, vector<16x64xf32> -> vector<16x64xf32>
    %227 = vector.broadcast %151 : vector<1x64xf32> to vector<16x64xf32>
    %228 = arith.addf %226, %227 : vector<16x64xf32>
    %cst_66 = arith.constant 0.000000e+00 : f32
    %229 = vector.broadcast %cst_66 : f32 to vector<16x64xf32>
    %230 = arith.maximumf %228, %229 : vector<16x64xf32>
    %cst_67 = arith.constant dense<0.000000e+00> : vector<16x32xf32>
    %231 = tpu.matmul %230, %148, %cst_67 {dimension_numbers = #tpu.dot_dimension_numbers<[1], [0], [0], [1], [0, 0, 1, 1], [], []>} : vector<16x64xf32>, vector<64x32xf32>, vector<16x32xf32> -> vector<16x32xf32>
    %232 = vector.broadcast %152 : vector<1x32xf32> to vector<16x32xf32>
    %233 = arith.addf %231, %232 : vector<16x32xf32>
    %234 = arith.addf %225, %233 : vector<16x32xf32>
    %cst_68 = arith.constant dense<0.000000e+00> : vector<16xf32>
    %235 = vector.multi_reduction <add>, %234, %cst_68 [1] : vector<16x32xf32> to vector<16xf32>
    %236 = vector.shape_cast %235 : vector<16xf32> to vector<16x1xf32>
    %cst_69 = arith.constant 3.125000e-02 : f32
    %237 = vector.broadcast %cst_69 : f32 to vector<16x1xf32>
    %238 = arith.mulf %236, %237 : vector<16x1xf32>
    %239 = vector.broadcast %238 : vector<16x1xf32> to vector<16x32xf32>
    %240 = arith.subf %234, %239 : vector<16x32xf32>
    %241 = arith.mulf %240, %240 : vector<16x32xf32>
    %cst_70 = arith.constant dense<0.000000e+00> : vector<16xf32>
    %242 = vector.multi_reduction <add>, %241, %cst_70 [1] : vector<16x32xf32> to vector<16xf32>
    %243 = vector.shape_cast %242 : vector<16xf32> to vector<16x1xf32>
    %cst_71 = arith.constant 3.125000e-02 : f32
    %244 = vector.broadcast %cst_71 : f32 to vector<16x1xf32>
    %245 = arith.mulf %243, %244 : vector<16x1xf32>
    %cst_72 = arith.constant 9.99999974E-6 : f32
    %246 = vector.broadcast %cst_72 : f32 to vector<16x1xf32>
    %247 = arith.addf %245, %246 : vector<16x1xf32>
    %248 = math.rsqrt %247 : vector<16x1xf32>
    %249 = vector.broadcast %248 : vector<16x1xf32> to vector<16x32xf32>
    %250 = arith.mulf %240, %249 : vector<16x32xf32>
    %251 = vector.broadcast %155 : vector<1x32xf32> to vector<16x32xf32>
    %252 = arith.mulf %250, %251 : vector<16x32xf32>
    %253 = vector.broadcast %156 : vector<1x32xf32> to vector<16x32xf32>
    %254 = arith.addf %252, %253 : vector<16x32xf32>
    %c32_73 = arith.constant 32 : index
    %c0_74 = arith.constant 0 : index
    %255 = vector.load %arg1[%c32_73, %c0_74] : memref<384x128xf32, #tpu.memory_space<vmem>>, vector<32x128xf32>
    %c0_75 = arith.constant 0 : index
    %c0_76 = arith.constant 0 : index
    %256 = vector.load %arg2[%c0_75, %c0_76] : memref<24x128xf32, #tpu.memory_space<vmem>>, vector<1x128xf32>
    %cst_77 = arith.constant dense<0.000000e+00> : vector<16x128xf32>
    %257 = tpu.matmul %254, %255, %cst_77 {dimension_numbers = #tpu.dot_dimension_numbers<[1], [0], [0], [1], [0, 0, 1, 1], [], []>} : vector<16x32xf32>, vector<32x128xf32>, vector<16x128xf32> -> vector<16x128xf32>
    %258 = vector.broadcast %256 : vector<1x128xf32> to vector<16x128xf32>
    %259 = arith.addf %257, %258 : vector<16x128xf32>
    %260 = vector.shape_cast %259 : vector<16x128xf32> to vector<2x8x128xf32>
    %cst_78 = arith.constant dense<0xFF800000> : vector<2x128xf32>
    %261 = vector.multi_reduction <maximumf>, %260, %cst_78 [1] : vector<2x8x128xf32> to vector<2x128xf32>
    %262 = vector.shape_cast %261 : vector<2x128xf32> to vector<2x1x128xf32>
    %263 = vector.broadcast %262 : vector<2x1x128xf32> to vector<2x8x128xf32>
    %264 = arith.subf %260, %263 : vector<2x8x128xf32>
    %265 = math.exp %264 : vector<2x8x128xf32>
    %cst_79 = arith.constant dense<0.000000e+00> : vector<2x128xf32>
    %266 = vector.multi_reduction <add>, %265, %cst_79 [1] : vector<2x8x128xf32> to vector<2x128xf32>
    %267 = vector.shape_cast %266 : vector<2x128xf32> to vector<2x1x128xf32>
    %268 = vector.broadcast %267 : vector<2x1x128xf32> to vector<2x8x128xf32>
    %269 = arith.divf %265, %268 : vector<2x8x128xf32>
    %c0_80 = arith.constant 0 : index
    %c0_81 = arith.constant 0 : index
    %c0_82 = arith.constant 0 : index
    %270 = vector.load %arg3[%c0_80, %c0_81, %c0_82] : memref<2x8x128xf32, #tpu.memory_space<vmem>>, vector<2x8x128xf32>
    tpu.vector_store %arg3[%c0_80, %c0_81, %c0_82], %269 {strides = array<i32>} : memref<2x8x128xf32, #tpu.memory_space<vmem>>, vector<2x8x128xf32>,
    return
  }
}

</mosaic_0001>

<bundles_post_ra>
// kernel: eq.1
= control target key start
LH: loop header
LB: loop body
LE: loop exit
PB: predicated region body
PF: predicated region fallthrough
CT: control target
= control target key end

     0   :  { %vm7_vm0 = vcmask 64512   ;;  %vm13_vm1 = vcmask 130112   ;;  %s39_s0 = inlined_call_operand.vmem [shape: s32[2,8], index: 0, kind: input, shape index: {}]   ;;  %s40_s1 = inlined_call_operand.vmem [shape: s32[16], index: 1, kind: output, shape index: {}]  }
   0x1   :  { %v4_v0 = vld [vmem:[%s39_s0] sm:$0x3]  ;;  %s22_s0 = smov 8  }
   0x2   :  { %5 = vst [vmem:[#allocation1] sm:$0x3] %v4_v0 }
   0x9   :  { %v10_v1 = vld [vmem:[#allocation1 + $0x1] sm:$0x1]   ;;  %v6_v2 = vld [vmem:[#allocation1] sm:$0x1]  }
   0xa   :  { %11 = vrot.lane.b32.xlu0 %v10_v1, %s22_s0  ;;  %8 = vst.msk [vmem:[#allocation0] sm:$0x1] %vm7_vm0, %v6_v2  }
  0x7c   :  { %v12_v3 = vpop.permute.xlu0 %11  }
  0x7d   :  { %14 = vst.msk [vmem:[#allocation0] sm:$0x1] %vm13_vm1, %v12_v3  }
  0x84   :  { %v18_v4 = vld [vmem:[#allocation0] sm:$0x1] }
  0x85   :  { %20 = vst [vmem:[%s40_s1] sm:$0x1] %v18_v4 }

// kernel: transformer_forward.1
= control target key start
LH: loop header
LB: loop body
LE: loop exit
PB: predicated region body
PF: predicated region fallthrough
CT: control target
= control target key end

     0   :  { %vm31_vm0 = vcmask 261120   ;;  %s3095_s0 = inlined_call_operand.vmem [shape: f32[96,128], index: 0, kind: input, shape index: {}]   ;;  %s3096_s1 = inlined_call_operand.vmem [shape: f32[384,128], index: 1, kind: input, shape index: {}]   ;;  %s3097_s2 = inlined_call_operand.vmem [shape: f32[24,128], index: 2, kind: input, shape index: {}]   ;;  %s3098_s3 = inlined_call_operand.hbm [shape: f32[2,8,128], index: 3, kind: output, shape index: {}]  }
   0x1   :  { %v27_v0 = vld [vmem:[%s3096_s1] sm:$0xff]  ;;  %v28_v1 = vld [vmem:[%s3096_s1 + $0x8] sm:$0xff]  ;;  %v29_v2 = vld [vmem:[%s3096_s1 + $0x10] sm:$0xff] }
   0x2   :  { %v2354_v3 = vpack.c.bf16 %v28_v1, %v27_v0  ;;  %v30_v4 = vld [vmem:[%s3096_s1 + $0x18] sm:$0xff]  ;;  %v15_v5 = vld [vmem:[%s3095_s0] sm:$0xff]  ;;  %v136_v8 = vld [vmem:[%s3096_s1 + $0x48] sm:$0xff] }
   0x3   :  { %v2358_v6 = vpack.c.bf16 %v30_v4, %v29_v2  ;;  %2172 = vmatprep.mubr.msk.f32.mxu0 %vm31_vm0, %v15_v5  ;;  %v135_v7 = vld [vmem:[%s3096_s1 + $0x40] sm:$0xff] }
   0x4   :  { %2355 = vmatprep.subr.bf16.mxu0 %v2354_v3  ;;  %v2362_v9 = vpack.c.bf16 %v136_v8, %v135_v7 }
   0x5   :  { %8 = vsyncpa [#allocation3], 0  ;;  %2357 = vmatpush3.bf16.msra.mxu0 %v2354_v3  ;;  %v16_v10 = vld [vmem:[%s3095_s0 + $0x8] sm:$0xff]  ;;  %v137_v11 = vld [vmem:[%s3096_s1 + $0x50] sm:$0xff]  ;;  %v113_v20 = vlaneseq  ;;  %v2608_v22 = vmov 0.0   ;;  %s2609_s11 = smov 96  }
   0x6   :  { %2359 = vmatprep.subr.bf16.mxu0 %v2358_v6  ;;  %2363 = vmatprep.subr.bf16.mxu1 %v2362_v9  ;;  %v138_v12 = vld [vmem:[%s3096_s1 + $0x58] sm:$0xff]  ;;  %v17_v14 = vld [vmem:[%s3095_s0 + $0x10] sm:$0xff]  ;;  %v1985_v26 = vld [vmem:[%s3097_s2 + $0x1] ss:$0 sm:$0xff]  ;;  %vm411_vm12 = vcmask 130048   ;;  %vm865_vm13 = vcmask 523264  }
   0x7   :  { %2365 = vmatpush3.bf16.msra.mxu1 %v2362_v9  ;;  %v2366_v13 = vpack.c.bf16 %v138_v12, %v137_v11  ;;  %v18_v15 = vld [vmem:[%s3095_s0 + $0x18] sm:$0xff]  ;;  %v114_v21 = vand.u32 127, %v113_v20  ;;  %vm2699_vm11 = vmpackc.low %vm31_vm0, %vm31_vm0  ;;  %v2724_v47 = vld [vmem:[%s3095_s0 + $0x28] sm:$0xff] }
   0x8   :  { %v2729_v50 = vld [vmem:[%s3095_s0 + $0x20] sm:$0xff]  ;;  %v2736_v55 = vld [vmem:[%s3095_s0 + $0x38] sm:$0xff]  ;;  %v2743_v61 = vld [vmem:[%s3095_s0 + $0x30] sm:$0xff] }
   0x9   :  { %2361 = vmatpush3.bf16.msra.mxu0 %v2358_v6  ;;  %2367 = vmatprep.subr.bf16.mxu1 %v2366_v13  ;;  %vm120_vm1 = vcmp.ge.s32.totalorder %v114_v21, 8  ;;  %vm121_vm2 = vcmp.lt.s32.totalorder %v114_v21, 16  ;;  %vm125_vm3 = vcmp.ge.s32.totalorder %v114_v21, 16  ;;  %vm126_vm4 = vcmp.lt.s32.totalorder %v114_v21, 24  ;;  %v2751_v4 = vld [vmem:[%s3095_s0 + $0x48] sm:$0xff]  ;;  %v2772_v20 = vld [vmem:[%s3095_s0 + $0x58] sm:$0xff] }
   0xa   :  { %vm122_vm5 = vmand %vm120_vm1, %vm121_vm2  ;;  %vm130_vm6 = vcmp.ge.s32.totalorder %v114_v21, 24  ;;  %vm131_vm7 = vcmp.lt.s32.totalorder %v114_v21, 32  ;;  %vm116_vm10 = vcmp.lt.s32.totalorder %v114_v21, 8 }
   0xb   :  { %2369 = vmatpush3.bf16.msra.mxu1 %v2366_v13  ;;  %v2680_v23 = vsel %vm122_vm5, 1.0, %v2608_v22  ;;  %vm127_vm8 = vmand %vm125_vm3, %vm126_vm4  ;;  %v2689_v30 = vsel %vm116_vm10, 1.0, %v2608_v22 }
   0xc   :  { %2173 = vmatmul.mubr.msk.f32.vlgmr.msra.gmra.mrb[0].mxu0 %vm31_vm0, %v16_v10  ;;  %v2682_v24 = vsel %vm127_vm8, 1.0, %v2608_v22  ;;  %vm132_vm9 = vmand %vm130_vm6, %vm131_vm7  ;;  %v2758_v10 = vld [vmem:[%s3095_s0 + $0x40] sm:$0xff] }
   0xd   :  { %v2684_v25 = vsel %vm132_vm9, 1.0, %v2608_v22 }
  0xdf   :  { %v2174_v16 = vpop.f32.mrb[0].mxu0 }
  0xe0   :  { %v104_v17 = vpop.f32.mrb[1].mxu0  ;;  %v2674_v19 = vadd.f32 %v2174_v16, %v18_v15 }
  0xe1   :  { %v2672_v18 = vadd.f32 %v104_v17, %v17_v14  ;;  %v2765_v14 = vld [vmem:[%s3095_s0 + $0x50] sm:$0xff]  ;;  %s2610_s0 = smov 64  }
  0xe3   :  { %2183 = vmatprep.mubr.msk.f32.mxu1 %vm31_vm0, %v2672_v18 }
  0xe4   :  { %2184 = vmatmul.mubr.msk.f32.vlgmr.msra.gmra.mrb[0].mxu1 %vm31_vm0, %v2674_v19 }
 0x1b7   :  { %v2185_v27 = vpop.f32.mrb[0].mxu1 }
 0x1b8   :  { %v245_v28 = vadd.f32 %v2185_v27, %v1985_v26  ;;  %v239_v29 = vpop.f32.mrb[1].mxu1 }
 0x1b9   :  { %v240_v31 = vadd.f32 %v1985_v26, %v239_v29 }
 0x1ba   :  { %v249_v39 = vmul.f32 %v2689_v30, %v245_v28  ;;  %v251_v41 = vmul.f32 %v2680_v23, %v245_v28  ;;  %v253_v43 = vmul.f32 %v2682_v24, %v245_v28  ;;  %v255_v45 = vmul.f32 %v2684_v25, %v245_v28 }
 0x1bb   :  { %v2691_v32 = vpack.i.bf16 %v245_v28, %v240_v31  ;;  %v248_v33 = vmul.f32 %v2689_v30, %v240_v31  ;;  %v250_v40 = vmul.f32 %v2680_v23, %v240_v31  ;;  %v252_v42 = vmul.f32 %v2682_v24, %v240_v31 }
 0x1bc   :  { %v254_v44 = vmul.f32 %v2684_v25, %v240_v31 }
 0x1bd   :  { %2477 = vrot.lane.b32.xlu0 %v2691_v32, %s2609_s11  ;;  %2190 = vmatprep.mubr.msk.f32.mxu0 %vm31_vm0, %v248_v33 }
 0x22f   :  { %v2478_v34 = vpop.permute.xlu0 %2477 }
 0x230   :  { %v2480_v35 = vunpack.i.h.bf16 %v2478_v34  ;;  %v2479_v36 = vunpack.i.l.bf16 %v2478_v34 }
 0x232   :  { %v2370_v38 = vpack.c.bf16 %v2480_v35, %v2479_v36 }
 0x234   :  { %2372 = vmatprep.subr.msk.bf16.mxu0 %vm2699_vm11, %v2370_v38 }
 0x235   :  { %2375 = vmatpush3.bf16.xpose.msk.msra.mxu0 %vm2699_vm11, %v2370_v38 }
 0x23c   :  { %2191 = vmatmul.mubr.msk.f32.vlgmr.msra.gmra.mrb[2].mxu0 %vm31_vm0, %v249_v39 }
 0x23d   :  { %2193 = vmatprep.mubr.msk.f32.mxu0 %vm31_vm0, %v250_v40 }
 0x240   :  { %2194 = vmatmul.mubr.msk.f32.gmra.mrb[4].mxu0 %vm31_vm0, %v251_v41 }
 0x241   :  { %2196 = vmatprep.mubr.msk.f32.mxu0 %vm31_vm0, %v252_v42 }
 0x244   :  { %2197 = vmatmul.mubr.msk.f32.gmra.mrb[6].mxu0 %vm31_vm0, %v253_v43 }
 0x245   :  { %2199 = vmatprep.mubr.msk.f32.mxu0 %vm31_vm0, %v254_v44 }
 0x248   :  { %2200 = vmatmul.mubr.msk.f32.gmra.mrb[8].mxu0 %vm31_vm0, %v255_v45 }
 0x30f   :  { %v2192_v46 = vpop.f32.mrb[2].mxu0 }
 0x310   :  { %v396_v48 = vmul.f32 0.35355338, %v2192_v46  ;;  %v356_v49 = vpop.f32.mrb[3].mxu0 }
 0x311   :  { %v395_v51 = vmul.f32 0.35355338, %v356_v49 }
 0x312   :  { %v404_v52 = vadd.f32 %v396_v48, %v2724_v47 }
 0x313   :  { %v2195_v53 = vpop.f32.mrb[4].mxu0  ;;  %v403_v54 = vadd.f32 %v395_v51, %v2729_v50 }
 0x314   :  { %v398_v56 = vmul.f32 0.35355338, %v2195_v53  ;;  %v366_v57 = vpop.f32.mrb[5].mxu0  ;;  %v415_v58 = vsel %vm411_vm12, %v404_v52, -inf }
 0x315   :  { %v397_v59 = vmul.f32 0.35355338, %v366_v57  ;;  %416 = vmax.xlane.f32.xlu1 %v415_v58  ;;  %v412_v60 = vsel %vm411_vm12, %v403_v54, -inf }
 0x316   :  { %413 = vmax.xlane.f32.xlu0 %v412_v60  ;;  %v406_v62 = vadd.f32 %v398_v56, %v2736_v55 }
 0x317   :  { %v2198_v63 = vpop.f32.mrb[6].mxu0  ;;  %v405_v3 = vadd.f32 %v397_v59, %v2743_v61 }
 0x318   :  { %v400_v0 = vmul.f32 0.35355338, %v2198_v63  ;;  %v376_v1 = vpop.f32.mrb[7].mxu0  ;;  %v421_v2 = vsel %vm411_vm12, %v406_v62, -inf }
 0x319   :  { %422 = vmax.xlane.f32.xlu1 %v421_v2  ;;  %v399_v6 = vmul.f32 0.35355338, %v376_v1  ;;  %v418_v8 = vsel %vm411_vm12, %v405_v3, -inf }
 0x31a   :  { %v408_v9 = vadd.f32 %v400_v0, %v2751_v4 }
 0x31b   :  { %v2201_v5 = vpop.f32.mrb[8].mxu0  ;;  %v407_v13 = vadd.f32 %v399_v6, %v2758_v10 }
 0x31c   :  { %v386_v7 = vpop.f32.mrb[9].mxu0  ;;  %v427_v12 = vsel %vm411_vm12, %v408_v9, -inf  ;;  %v402_v15 = vmul.f32 0.35355338, %v2201_v5 }
 0x31d   :  { %419 = vmax.xlane.f32.xlu1 %v418_v8  ;;  %v401_v11 = vmul.f32 0.35355338, %v386_v7  ;;  %v424_v16 = vsel %vm411_vm12, %v407_v13, -inf }
 0x31e   :  { %v410_v22 = vadd.f32 %v402_v15, %v2772_v20 }
 0x31f   :  { %v409_v17 = vadd.f32 %v401_v11, %v2765_v14 }
 0x320   :  { %v433_v26 = vsel %vm411_vm12, %v410_v22, -inf }
 0x321   :  { %428 = vmax.xlane.f32.xlu1 %v427_v12  ;;  %v430_v21 = vsel %vm411_vm12, %v409_v17, -inf }
 0x325   :  { %425 = vmax.xlane.f32.xlu1 %v424_v16 }
 0x329   :  { %431 = vmax.xlane.f32.xlu1 %v430_v21 }
 0x32d   :  { %434 = vmax.xlane.f32.xlu1 %v433_v26 }
 0x3a2   :  { %v417_v27 = vpop.xlane.xlu1 %416 }
 0x3a3   :  { %v437_v28 = vsub.f32 %v404_v52, %v417_v27  ;;  %v414_v29 = vpop.xlane.xlu0 %413 }
 0x3a4   :  { %v436_v31 = vsub.f32 %v403_v54, %v414_v29 }
 0x3a5   :  { %v446_v33 = vmul.f32 1.442695, %v437_v28 }
 0x3a6   :  { %v444_v34 = vmul.f32 1.442695, %v436_v31  ;;  %v423_v35 = vpop.xlane.xlu1 %422 }
 0x3a7   :  { %v439_v36 = vsub.f32 %v406_v62, %v423_v35 }
 0x3a8   :  { %2496 = vpow2.f32 %v444_v34 }
 0x3a9   :  { %2498 = vpow2.f32 %v446_v33  ;;  %v450_v38 = vmul.f32 1.442695, %v439_v36 }
 0x3aa   :  { %v420_v39 = vpop.xlane.xlu1 %419 }
 0x3ab   :  { %v438_v40 = vsub.f32 %v405_v3, %v420_v39  ;;  %2500 = vpow2.f32 %v450_v38 }
 0x3ad   :  { %v448_v41 = vmul.f32 1.442695, %v438_v40 }
 0x3ae   :  { %v429_v42 = vpop.xlane.xlu1 %428 }
 0x3af   :  { %2502 = vpow2.f32 %v448_v41  ;;  %v441_v43 = vsub.f32 %v408_v9, %v429_v42 }
 0x3b1   :  { %v454_v44 = vmul.f32 1.442695, %v441_v43 }
 0x3b2   :  { %v2497_v45 = vpop.eup %2496  ;;  %v426_v46 = vpop.xlane.xlu1 %425 }
 0x3b3   :  { %2504 = vpow2.f32 %v454_v44  ;;  %v440_v48 = vsub.f32 %v407_v13, %v426_v46  ;;  %v460_v49 = vsel %vm411_vm12, %v2497_v45, 0.0  ;;  %v2499_v51 = vpop.eup %2498 }
 0x3b4   :  { %461 = vadd.xlane.f32.xlu1 %v460_v49  ;;  %v463_v56 = vsel %vm411_vm12, %v2499_v51, 0.0 }
 0x3b5   :  { %v452_v52 = vmul.f32 1.442695, %v440_v48  ;;  %v2501_v57 = vpop.eup %2500 }
 0x3b6   :  { %v432_v53 = vpop.xlane.xlu1 %431  ;;  %v469_v0 = vsel %vm411_vm12, %v2501_v57, 0.0 }
 0x3b7   :  { %2506 = vpow2.f32 %v452_v52  ;;  %v442_v54 = vsub.f32 %v409_v17, %v432_v53  ;;  %v140_v52 = vld [vmem:[%s3096_s1 + $0x68] sm:$0xff] }
 0x3b8   :  { %464 = vadd.xlane.f32.xlu1 %v463_v56  ;;  %v142_v56 = vld [vmem:[%s3096_s1 + $0x78] sm:$0xff] }
 0x3b9   :  { %v2503_v58 = vpop.eup %2502  ;;  %v456_v59 = vmul.f32 1.442695, %v442_v54  ;;  %v141_v54 = vld [vmem:[%s3096_s1 + $0x70] sm:$0xff] }
 0x3ba   :  { %v435_v60 = vpop.xlane.xlu1 %434  ;;  %v466_v62 = vsel %vm411_vm12, %v2503_v58, 0.0 }
 0x3bb   :  { %2508 = vpow2.f32 %v456_v59  ;;  %v443_v63 = vsub.f32 %v410_v22, %v435_v60  ;;  %467 = vadd.xlane.f32.xlu0 %v466_v62 }
 0x3bc   :  { %470 = vadd.xlane.f32.xlu1 %v469_v0 }
 0x3bd   :  { %v2505_v1 = vpop.eup %2504  ;;  %v458_v2 = vmul.f32 1.442695, %v443_v63 }
 0x3be   :  { %v475_v3 = vsel %vm411_vm12, %v2505_v1, 0.0 }
 0x3bf   :  { %2510 = vpow2.f32 %v458_v2 }
 0x3c0   :  { %476 = vadd.xlane.f32.xlu1 %v475_v3 }
 0x3c1   :  { %v2507_v5 = vpop.eup %2506 }
 0x3c2   :  { %v472_v6 = vsel %vm411_vm12, %v2507_v5, 0.0 }
 0x3c3   :  { %473 = vadd.xlane.f32.xlu0 %v472_v6 }
 0x3c5   :  { %v2509_v7 = vpop.eup %2508 }
 0x3c6   :  { %v478_v8 = vsel %vm411_vm12, %v2509_v7, 0.0 }
 0x3c7   :  { %479 = vadd.xlane.f32.xlu0 %v478_v8 }
 0x3c9   :  { %v2511_v9 = vpop.eup %2510 }
 0x3ca   :  { %v481_v11 = vsel %vm411_vm12, %v2511_v9, 0.0 }
 0x3cb   :  { %482 = vadd.xlane.f32.xlu1 %v481_v11 }
 0x3dd   :  { %2482 = vrot.lane.b32.xlu0 %v2691_v32, %s2610_s0 }
 0x441   :  { %v462_v12 = vpop.xlane.xlu1 %461 }
 0x442   :  { %2512 = vrcp.f32 %v462_v12 }
 0x445   :  { %v465_v13 = vpop.xlane.xlu1 %464 }
 0x446   :  { %2514 = vrcp.f32 %v465_v13 }
 0x448   :  { %v468_v16 = vpop.xlane.xlu0 %467 }
 0x449   :  { %v471_v22 = vpop.xlane.xlu1 %470  ;;  %2516 = vrcp.f32 %v468_v16 }
 0x44a   :  { %2518 = vrcp.f32 %v471_v22 }
 0x44c   :  { %v2513_v15 = vpop.eup %2512 }
 0x44d   :  { %v492_v17 = vmul.f32 %v2513_v15, %v2497_v45  ;;  %v477_v27 = vpop.xlane.xlu1 %476 }
 0x44f   :  { %2206 = vmatprep.mubr.msk.f32.mxu1 %vm411_vm12, %v492_v17 }
 0x450   :  { %v474_v21 = vpop.xlane.xlu0 %473  ;;  %v2515_v34 = vpop.eup %2514 }
 0x451   :  { %2520 = vrcp.f32 %v474_v21  ;;  %v493_v36 = vmul.f32 %v2515_v34, %v2499_v51  ;;  %v139_v51 = vld [vmem:[%s3096_s1 + $0x60] sm:$0xff] }
 0x452   :  { %2522 = vrcp.f32 %v477_v27  ;;  %v2380_v53 = vpack.c.bf16 %v140_v52, %v139_v51  ;;  %v146_v51 = vld [vmem:[%s3096_s1 + $0x98] sm:$0xff] }
 0x453   :  { %v2517_v35 = vpop.eup %2516 }
 0x454   :  { %v480_v26 = vpop.xlane.xlu0 %479  ;;  %v2519_v38 = vpop.eup %2518  ;;  %v494_v39 = vmul.f32 %v2517_v35, %v2503_v58 }
 0x455   :  { %2524 = vrcp.f32 %v480_v26  ;;  %v495_v41 = vmul.f32 %v2519_v38, %v2501_v57  ;;  %v2384_v57 = vpack.c.bf16 %v142_v56, %v141_v54  ;;  %v2006_v26 = vld [vmem:[%s3097_s2 + $0x2] ss:$0 sm:$0xff]  ;;  %v148_v54 = vld [vmem:[%s3096_s1 + $0xa8] sm:$0xff]  ;;  %v149_v56 = vld [vmem:[%s3096_s1 + $0xb0] sm:$0xff] }
 0x458   :  { %v2483_v28 = vpop.permute.xlu0 %2482  ;;  %v483_v33 = vpop.xlane.xlu1 %482 }
 0x459   :  { %v2485_v29 = vunpack.i.h.bf16 %v2483_v28  ;;  %v2484_v31 = vunpack.i.l.bf16 %v2483_v28  ;;  %2526 = vrcp.f32 %v483_v33 }
 0x45b   :  { %v2376_v32 = vpack.c.bf16 %v2485_v29, %v2484_v31  ;;  %v2521_v40 = vpop.eup %2520 }
 0x45c   :  { %v2523_v42 = vpop.eup %2522  ;;  %v496_v43 = vmul.f32 %v2521_v40, %v2507_v5 }
 0x45d   :  { %2377 = vmatprep.subr.bf16.mxu1 %v2376_v32  ;;  %v497_v45 = vmul.f32 %v2523_v42, %v2505_v1 }
 0x45e   :  { %2379 = vmatpush3.bf16.msra.mxu1 %v2376_v32 }
 0x45f   :  { %v2525_v44 = vpop.eup %2524  ;;  %2381 = vmatprep.subr.bf16.mxu1 %v2380_v53 }
 0x460   :  { %v498_v48 = vmul.f32 %v2525_v44, %v2509_v7 }
 0x461   :  { %2207 = vmatmul.mubr.msk.f32.vlgmr.msra.gmra.mrb[2].mxu1 %vm411_vm12, %v493_v36 }
 0x462   :  { %2209 = vmatprep.mubr.msk.f32.mxu1 %vm411_vm12, %v494_v39  ;;  %2383 = vmatpush3.bf16.msra.mxu1 %v2380_v53  ;;  %v147_v53 = vld [vmem:[%s3096_s1 + $0xa0] sm:$0xff] }
 0x463   :  { %v2527_v46 = vpop.eup %2526  ;;  %2385 = vmatprep.subr.bf16.mxu1 %v2384_v57 }
 0x464   :  { %v499_v49 = vmul.f32 %v2527_v46, %v2511_v9  ;;  %v144_v46 = vld [vmem:[%s3096_s1 + $0x88] sm:$0xff] }
 0x465   :  { %2210 = vmatmul.mubr.msk.f32.gmra.mrb[4].mxu1 %vm411_vm12, %v495_v41 }
 0x466   :  { %2212 = vmatprep.mubr.msk.f32.mxu1 %vm411_vm12, %v496_v43  ;;  %2387 = vmatpush3.bf16.msra.mxu1 %v2384_v57  ;;  %v2396_v57 = vpack.c.bf16 %v148_v54, %v147_v53 }
 0x468   :  { %2397 = vmatprep.subr.bf16.mxu1 %v2396_v57 }
 0x469   :  { %2213 = vmatmul.mubr.msk.f32.gmra.mrb[6].mxu1 %vm411_vm12, %v497_v45 }
 0x46a   :  { %2215 = vmatprep.mubr.msk.f32.mxu1 %vm411_vm12, %v498_v48 }
 0x46d   :  { %2216 = vmatmul.mubr.msk.f32.gmra.mrb[8].mxu1 %vm411_vm12, %v499_v49  ;;  %v145_v49 = vld [vmem:[%s3096_s1 + $0x90] sm:$0xff] }
 0x46e   :  { %v2392_v52 = vpack.c.bf16 %v146_v51, %v145_v49 }
 0x534   :  { %v2208_v58 = vpop.f32.mrb[2].mxu1 }
 0x535   :  { %v596_v59 = vpop.f32.mrb[3].mxu1  ;;  %v636_v62 = vmul.f32 %v2208_v58, %v2689_v30  ;;  %v150_v58 = vld [vmem:[%s3096_s1 + $0xb8] sm:$0xff] }
 0x536   :  { %v635_v1 = vmul.f32 %v2689_v30, %v596_v59  ;;  %v2400_v59 = vpack.c.bf16 %v150_v58, %v149_v56  ;;  %v988_v58 = vld [vmem:[%s3096_s1 + $0xe8] sm:$0xff] }
 0x538   :  { %v2211_v60 = vpop.f32.mrb[4].mxu1 }
 0x539   :  { %v638_v63 = vmul.f32 %v2211_v60, %v2680_v23  ;;  %v606_v0 = vpop.f32.mrb[5].mxu1  ;;  %v151_v60 = vld [vmem:[%s3096_s1 + $0xc0] sm:$0xff] }
 0x53a   :  { %v637_v2 = vmul.f32 %v2680_v23, %v606_v0 }
 0x53b   :  { %v640_v3 = vadd.f32 %v638_v63, %v636_v62  ;;  %v152_v62 = vld [vmem:[%s3096_s1 + $0xc8] sm:$0xff] }
 0x53c   :  { %v639_v5 = vadd.f32 %v637_v2, %v635_v1  ;;  %v2214_v6 = vpop.f32.mrb[6].mxu1  ;;  %v2404_v63 = vpack.c.bf16 %v152_v62, %v151_v60  ;;  %v989_v60 = vld [vmem:[%s3096_s1 + $0xf0] sm:$0xff]  ;;  %v990_v62 = vld [vmem:[%s3096_s1 + $0xf8] sm:$0xff] }
 0x53d   :  { %v642_v7 = vmul.f32 %v2214_v6, %v2682_v24  ;;  %v616_v8 = vpop.f32.mrb[7].mxu1 }
 0x53e   :  { %v641_v9 = vmul.f32 %v2682_v24, %v616_v8  ;;  %v2009_v8 = vld [vmem:[%s3097_s2 + $0x5] ss:$0 sm:$0xff] }
 0x53f   :  { %v644_v11 = vadd.f32 %v642_v7, %v640_v3 }
 0x540   :  { %v643_v12 = vadd.f32 %v641_v9, %v639_v5  ;;  %v2217_v13 = vpop.f32.mrb[8].mxu1 }
 0x541   :  { %v646_v15 = vmul.f32 %v2217_v13, %v2684_v25  ;;  %v626_v16 = vpop.f32.mrb[9].mxu1 }
 0x542   :  { %v645_v17 = vmul.f32 %v2684_v25, %v626_v16 }
 0x543   :  { %v648_v21 = vadd.f32 %v646_v15, %v644_v11  ;;  %v2010_v11 = vld [vmem:[%s3097_s2 + $0x6] ss:$0 sm:$0xff] }
 0x544   :  { %v647_v22 = vadd.f32 %v645_v17, %v643_v12 }
 0x546   :  { %2226 = vmatprep.mubr.msk.f32.mxu1 %vm31_vm0, %v647_v22  ;;  %v153_v22 = vld [vmem:[%s3096_s1 + $0xd0] sm:$0xff] }
 0x547   :  { %2227 = vmatmul.mubr.msk.f32.vlgmr.msra.gmra.mrb[10].mxu1 %vm31_vm0, %v648_v21 }
 0x548   :  { %2399 = vmatpush3.bf16.msra.mxu1 %v2396_v57  ;;  %v987_v57 = vld [vmem:[%s3096_s1 + $0xe0] sm:$0xff] }
 0x549   :  { %2401 = vmatprep.subr.bf16.mxu1 %v2400_v59 }
 0x54c   :  { %2403 = vmatpush3.bf16.msra.mxu1 %v2400_v59  ;;  %v2412_v59 = vpack.c.bf16 %v988_v58, %v987_v57 }
 0x54d   :  { %2405 = vmatprep.subr.bf16.mxu1 %v2404_v63 }
 0x550   :  { %2407 = vmatpush3.bf16.msra.mxu1 %v2404_v63  ;;  %v2416_v63 = vpack.c.bf16 %v990_v62, %v989_v60 }
 0x61a   :  { %v2228_v27 = vpop.f32.mrb[10].mxu1 }
 0x61b   :  { %v725_v28 = vpop.f32.mrb[11].mxu1  ;;  %v731_v29 = vadd.f32 %v2228_v27, %v2006_v26 }
 0x61c   :  { %v726_v31 = vadd.f32 %v2006_v26, %v725_v28  ;;  %v154_v26 = vld [vmem:[%s3096_s1 + $0xd8] sm:$0xff]  ;;  %v2011_v28 = vld [vmem:[%s3097_s2 + $0x3] ss:$0 sm:$0xff] }
 0x61d   :  { %v735_v34 = vadd.f32 %v731_v29, %v2674_v19  ;;  %v143_v19 = vld [vmem:[%s3096_s1 + $0x80] sm:$0xff]  ;;  %v2408_v27 = vpack.c.bf16 %v154_v26, %v153_v22  ;;  %v2019_v22 = vld [vmem:[%s3097_s2 + $0x9] ss:$0 sm:$0xff] }
 0x61e   :  { %v734_v32 = vadd.f32 %v726_v31, %v2672_v18  ;;  %v2388_v48 = vpack.c.bf16 %v144_v46, %v143_v19 }
 0x61f   :  { %v739_v35 = vsel %vm31_vm0, %v735_v34, 0.0  ;;  %2409 = vmatprep.subr.bf16.mxu1 %v2408_v27 }
 0x620   :  { %v736_v33 = vsel %vm31_vm0, %v734_v32, 0.0  ;;  %2389 = vmatprep.subr.bf16.mxu0 %v2388_v48  ;;  %2411 = vmatpush3.bf16.msra.mxu1 %v2408_v27 }
 0x621   :  { %737 = vadd.xlane.f32.xlu1 %v736_v33  ;;  %2391 = vmatpush3.bf16.msra.mxu0 %v2388_v48 }
 0x622   :  { %2393 = vmatprep.subr.bf16.mxu0 %v2392_v52 }
 0x625   :  { %740 = vadd.xlane.f32.xlu1 %v739_v35  ;;  %2395 = vmatpush3.bf16.msra.mxu0 %v2392_v52 }
 0x626   :  { %2413 = vmatprep.subr.bf16.mxu0 %v2412_v59 }
 0x6ae   :  { %v738_v36 = vpop.xlane.xlu1 %737 }
 0x6af   :  { %v742_v38 = vmul.f32 0.03125, %v738_v36  ;;  %v2014_v36 = vld [vmem:[%s3097_s2 + $0x4] ss:$0 sm:$0xff] }
 0x6b1   :  { %v744_v39 = vsub.f32 %v734_v32, %v742_v38 }
 0x6b2   :  { %v741_v40 = vpop.xlane.xlu1 %740 }
 0x6b3   :  { %v743_v41 = vmul.f32 0.03125, %v741_v40  ;;  %v746_v42 = vmul.f32 %v744_v39, %v744_v39 }
 0x6b5   :  { %v745_v43 = vsub.f32 %v735_v34, %v743_v41  ;;  %v748_v44 = vsel %vm31_vm0, %v746_v42, 0.0 }
 0x6b6   :  { %749 = vadd.xlane.f32.xlu1 %v748_v44 }
 0x6b7   :  { %v747_v45 = vmul.f32 %v745_v43, %v745_v43 }
 0x6b9   :  { %v751_v18 = vsel %vm31_vm0, %v747_v45, 0.0 }
 0x6ba   :  { %752 = vadd.xlane.f32.xlu1 %v751_v18 }
 0x743   :  { %v750_v0 = vpop.xlane.xlu1 %749 }
 0x744   :  { %v754_v1 = vmul.f32 0.03125, %v750_v0 }
 0x746   :  { %v756_v2 = vadd.f32 1e-05, %v754_v1 }
 0x747   :  { %v753_v3 = vpop.xlane.xlu1 %752 }
 0x748   :  { %2528 = vrsqrt.f32 %v756_v2  ;;  %v755_v5 = vmul.f32 0.03125, %v753_v3 }
 0x74a   :  { %v757_v6 = vadd.f32 1e-05, %v755_v5 }
 0x74c   :  { %2530 = vrsqrt.f32 %v757_v6 }
 0x752   :  { %v2529_v7 = vpop.eup %2528 }
 0x753   :  { %v760_v9 = vmul.f32 %v2529_v7, %v744_v39 }
 0x755   :  { %v766_v12 = vmul.f32 %v2009_v8, %v760_v9 }
 0x756   :  { %v2531_v13 = vpop.eup %2530 }
 0x757   :  { %v761_v15 = vmul.f32 %v2531_v13, %v745_v43  ;;  %v772_v16 = vadd.f32 %v2010_v11, %v766_v12 }
 0x759   :  { %v767_v17 = vmul.f32 %v2009_v8, %v761_v15  ;;  %2237 = vmatprep.mubr.msk.f32.mxu0 %vm31_vm0, %v772_v16  ;;  %v2017_v8 = vld [vmem:[%s3097_s2 + $0x7] ss:$0 sm:$0xff] }
 0x75b   :  { %v773_v21 = vadd.f32 %v2010_v11, %v767_v17  ;;  %v2018_v11 = vld [vmem:[%s3097_s2 + $0x8] ss:$0 sm:$0xff] }
 0x75d   :  { %2238 = vmatmul.mubr.msk.f32.vlgmr.msra.gmra.mrb[10].mxu0 %vm31_vm0, %v773_v21 }
 0x75e   :  { %2415 = vmatpush3.bf16.msra.mxu0 %v2412_v59 }
 0x75f   :  { %2417 = vmatprep.subr.bf16.mxu0 %v2416_v63 }
 0x762   :  { %2419 = vmatpush3.bf16.msra.mxu0 %v2416_v63 }
 0x830   :  { %v2239_v29 = vpop.f32.mrb[10].mxu0 }
 0x831   :  { %v856_v31 = vadd.f32 %v2239_v29, %v2011_v28  ;;  %v850_v32 = vpop.f32.mrb[11].mxu0 }
 0x832   :  { %v851_v33 = vadd.f32 %v2011_v28, %v850_v32 }
 0x833   :  { %v860_v35 = vmax.f32 %v856_v31, 0.0 }
 0x834   :  { %v859_v34 = vmax.f32 %v851_v33, 0.0 }
 0x836   :  { %2256 = vmatprep.mubr.msk.f32.mxu1 %vm865_vm13, %v859_v34 }
 0x837   :  { %2257 = vmatmul.mubr.msk.f32.vlgmr.msra.gmra.mrb[12].mxu1 %vm865_vm13, %v860_v35 }
 0x90a   :  { %v2258_v38 = vpop.f32.mrb[12].mxu1 }
 0x90b   :  { %v938_v39 = vpop.f32.mrb[13].mxu1  ;;  %v944_v40 = vadd.f32 %v2258_v38, %v2014_v36 }
 0x90c   :  { %v939_v41 = vadd.f32 %v2014_v36, %v938_v39 }
 0x90d   :  { %v948_v44 = vadd.f32 %v944_v40, %v773_v21 }
 0x90e   :  { %v947_v42 = vadd.f32 %v939_v41, %v772_v16 }
 0x90f   :  { %v952_v45 = vsel %vm31_vm0, %v948_v44, 0.0 }
 0x910   :  { %v949_v43 = vsel %vm31_vm0, %v947_v42, 0.0 }
 0x911   :  { %950 = vadd.xlane.f32.xlu1 %v949_v43 }
 0x915   :  { %953 = vadd.xlane.f32.xlu1 %v952_v45 }
 0x99e   :  { %v951_v18 = vpop.xlane.xlu1 %950 }
 0x99f   :  { %v955_v19 = vmul.f32 0.03125, %v951_v18 }
 0x9a1   :  { %v957_v46 = vsub.f32 %v947_v42, %v955_v19 }
 0x9a2   :  { %v954_v48 = vpop.xlane.xlu1 %953 }
 0x9a3   :  { %v956_v49 = vmul.f32 0.03125, %v954_v48  ;;  %v959_v51 = vmul.f32 %v957_v46, %v957_v46 }
 0x9a5   :  { %v958_v52 = vsub.f32 %v948_v44, %v956_v49  ;;  %v961_v53 = vsel %vm31_vm0, %v959_v51, 0.0 }
 0x9a6   :  { %962 = vadd.xlane.f32.xlu0 %v961_v53 }
 0x9a7   :  { %v960_v54 = vmul.f32 %v958_v52, %v958_v52 }
 0x9a9   :  { %v964_v56 = vsel %vm31_vm0, %v960_v54, 0.0 }
 0x9aa   :  { %965 = vadd.xlane.f32.xlu1 %v964_v56 }
 0xa33   :  { %v963_v0 = vpop.xlane.xlu0 %962 }
 0xa34   :  { %v967_v1 = vmul.f32 0.03125, %v963_v0 }
 0xa36   :  { %v969_v2 = vadd.f32 1e-05, %v967_v1 }
 0xa37   :  { %v966_v3 = vpop.xlane.xlu1 %965 }
 0xa38   :  { %2532 = vrsqrt.f32 %v969_v2  ;;  %v968_v5 = vmul.f32 0.03125, %v966_v3 }
 0xa3a   :  { %v970_v6 = vadd.f32 1e-05, %v968_v5 }
 0xa3c   :  { %2534 = vrsqrt.f32 %v970_v6 }
 0xa42   :  { %v2533_v7 = vpop.eup %2532 }
 0xa43   :  { %v973_v9 = vmul.f32 %v2533_v7, %v957_v46 }
 0xa45   :  { %v979_v12 = vmul.f32 %v2017_v8, %v973_v9 }
 0xa46   :  { %v2535_v13 = vpop.eup %2534 }
 0xa47   :  { %v974_v15 = vmul.f32 %v2535_v13, %v958_v52  ;;  %v2900_v16 = vadd.f32 %v2018_v11, %v979_v12 }
 0xa49   :  { %v980_v17 = vmul.f32 %v2017_v8, %v974_v15  ;;  %2267 = vmatprep.mubr.msk.f32.mxu0 %vm31_vm0, %v2900_v16 }
 0xa4b   :  { %v2904_v21 = vadd.f32 %v2018_v11, %v980_v17 }
 0xa4d   :  { %2268 = vmatmul.mubr.msk.f32.vlgmr.msra.gmra.mrb[12].mxu0 %vm31_vm0, %v2904_v21 }
 0xb20   :  { %v2269_v26 = vpop.f32.mrb[12].mxu0 }
 0xb21   :  { %v1097_v27 = vadd.f32 %v2269_v26, %v2019_v22  ;;  %v1091_v28 = vpop.f32.mrb[13].mxu0 }
 0xb22   :  { %v1092_v29 = vadd.f32 %v2019_v22, %v1091_v28 }
 0xb23   :  { %v1101_v38 = vmul.f32 %v2689_v30, %v1097_v27  ;;  %v1103_v40 = vmul.f32 %v2680_v23, %v1097_v27  ;;  %v1105_v42 = vmul.f32 %v2682_v24, %v1097_v27  ;;  %v1107_v43 = vmul.f32 %v2684_v25, %v1097_v27 }
 0xb24   :  { %v2911_v31 = vpack.i.bf16 %v1097_v27, %v1092_v29  ;;  %v1100_v32 = vmul.f32 %v2689_v30, %v1092_v29  ;;  %v1102_v39 = vmul.f32 %v2680_v23, %v1092_v29  ;;  %v1104_v41 = vmul.f32 %v2682_v24, %v1092_v29 }
 0xb25   :  { %v1106_v37 = vmul.f32 %v2684_v25, %v1092_v29 }
 0xb26   :  { %2487 = vrot.lane.b32.xlu1 %v2911_v31, %s2609_s11  ;;  %2274 = vmatprep.mubr.msk.f32.mxu0 %vm31_vm0, %v1100_v32 }
 0xb98   :  { %v2488_v33 = vpop.permute.xlu1 %2487 }
 0xb99   :  { %v2490_v34 = vunpack.i.h.bf16 %v2488_v33  ;;  %v2489_v35 = vunpack.i.l.bf16 %v2488_v33 }
 0xb9b   :  { %v2420_v36 = vpack.c.bf16 %v2490_v34, %v2489_v35 }
 0xb9d   :  { %2422 = vmatprep.subr.msk.bf16.mxu0 %vm2699_vm11, %v2420_v36 }
 0xb9e   :  { %2425 = vmatpush3.bf16.xpose.msk.msra.mxu0 %vm2699_vm11, %v2420_v36 }
 0xba5   :  { %2275 = vmatmul.mubr.msk.f32.vlgmr.msra.gmra.mrb[14].mxu0 %vm31_vm0, %v1101_v38 }
 0xba6   :  { %2277 = vmatprep.mubr.msk.f32.mxu0 %vm31_vm0, %v1102_v39 }
 0xba9   :  { %2278 = vmatmul.mubr.msk.f32.gmra.mrb[16].mxu0 %vm31_vm0, %v1103_v40 }
 0xbaa   :  { %2280 = vmatprep.mubr.msk.f32.mxu0 %vm31_vm0, %v1104_v41 }
 0xbad   :  { %2281 = vmatmul.mubr.msk.f32.gmra.mrb[18].mxu0 %vm31_vm0, %v1105_v42 }
 0xbae   :  { %2283 = vmatprep.mubr.msk.f32.mxu0 %vm31_vm0, %v1106_v37 }
 0xbb1   :  { %2284 = vmatmul.mubr.msk.f32.gmra.mrb[20].mxu0 %vm31_vm0, %v1107_v43 }
 0xc78   :  { %v2276_v44 = vpop.f32.mrb[14].mxu0 }
 0xc79   :  { %v1248_v45 = vmul.f32 0.35355338, %v2276_v44  ;;  %v1208_v18 = vpop.f32.mrb[15].mxu0 }
 0xc7a   :  { %v1247_v19 = vmul.f32 0.35355338, %v1208_v18 }
 0xc7b   :  { %v1256_v46 = vadd.f32 %v1248_v45, %v2724_v47 }
 0xc7c   :  { %v2279_v48 = vpop.f32.mrb[16].mxu0  ;;  %v1255_v49 = vadd.f32 %v1247_v19, %v2729_v50 }
 0xc7d   :  { %v1250_v51 = vmul.f32 0.35355338, %v2279_v48  ;;  %v1218_v52 = vpop.f32.mrb[17].mxu0  ;;  %v1266_v53 = vsel %vm411_vm12, %v1256_v46, -inf }
 0xc7e   :  { %v1249_v54 = vmul.f32 0.35355338, %v1218_v52  ;;  %1267 = vmax.xlane.f32.xlu0 %v1266_v53  ;;  %v1263_v56 = vsel %vm411_vm12, %v1255_v49, -inf }
 0xc7f   :  { %1264 = vmax.xlane.f32.xlu1 %v1263_v56  ;;  %v1258_v57 = vadd.f32 %v1250_v51, %v2736_v55 }
 0xc80   :  { %v2282_v58 = vpop.f32.mrb[18].mxu0  ;;  %v1257_v47 = vadd.f32 %v1249_v54, %v2743_v61 }
 0xc81   :  { %v1252_v59 = vmul.f32 0.35355338, %v2282_v58  ;;  %v1228_v60 = vpop.f32.mrb[19].mxu0  ;;  %v1272_v62 = vsel %vm411_vm12, %v1258_v57, -inf }
 0xc82   :  { %1273 = vmax.xlane.f32.xlu0 %v1272_v62  ;;  %v1251_v63 = vmul.f32 0.35355338, %v1228_v60  ;;  %v1269_v1 = vsel %vm411_vm12, %v1257_v47, -inf }
 0xc83   :  { %v1260_v2 = vadd.f32 %v1252_v59, %v2751_v4 }
 0xc84   :  { %v2285_v50 = vpop.f32.mrb[20].mxu0  ;;  %v1259_v55 = vadd.f32 %v1251_v63, %v2758_v10 }
 0xc85   :  { %v1238_v0 = vpop.f32.mrb[21].mxu0  ;;  %v1278_v5 = vsel %vm411_vm12, %v1260_v2, -inf  ;;  %v1254_v6 = vmul.f32 0.35355338, %v2285_v50 }
 0xc86   :  { %1270 = vmax.xlane.f32.xlu0 %v1269_v1  ;;  %v1253_v3 = vmul.f32 0.35355338, %v1238_v0  ;;  %v1275_v7 = vsel %vm411_vm12, %v1259_v55, -inf }
 0xc87   :  { %v1262_v9 = vadd.f32 %v1254_v6, %v2772_v20 }
 0xc88   :  { %v1261_v61 = vadd.f32 %v1253_v3, %v2765_v14 }
 0xc89   :  { %v1284_v4 = vsel %vm411_vm12, %v1262_v9, -inf }
 0xc8a   :  { %1279 = vmax.xlane.f32.xlu0 %v1278_v5  ;;  %v1281_v8 = vsel %vm411_vm12, %v1261_v61, -inf }
 0xc8e   :  { %1276 = vmax.xlane.f32.xlu0 %v1275_v7 }
 0xc92   :  { %1282 = vmax.xlane.f32.xlu0 %v1281_v8 }
 0xc96   :  { %1285 = vmax.xlane.f32.xlu0 %v1284_v4 }
 0xd0b   :  { %v1268_v11 = vpop.xlane.xlu0 %1267 }
 0xd0c   :  { %v1288_v12 = vsub.f32 %v1256_v46, %v1268_v11  ;;  %v1265_v13 = vpop.xlane.xlu1 %1264 }
 0xd0d   :  { %v1287_v15 = vsub.f32 %v1255_v49, %v1265_v13 }
 0xd0e   :  { %v1297_v10 = vmul.f32 1.442695, %v1288_v12 }
 0xd0f   :  { %v1295_v17 = vmul.f32 1.442695, %v1287_v15  ;;  %v1274_v22 = vpop.xlane.xlu0 %1273 }
 0xd10   :  { %2536 = vpow2.f32 %v1297_v10  ;;  %v1290_v26 = vsub.f32 %v1258_v57, %v1274_v22 }
 0xd11   :  { %2538 = vpow2.f32 %v1295_v17 }
 0xd12   :  { %v1301_v14 = vmul.f32 1.442695, %v1290_v26 }
 0xd13   :  { %v1271_v27 = vpop.xlane.xlu0 %1270 }
 0xd14   :  { %2540 = vpow2.f32 %v1301_v14  ;;  %v1289_v28 = vsub.f32 %v1257_v47, %v1271_v27 }
 0xd16   :  { %v1299_v29 = vmul.f32 1.442695, %v1289_v28  ;;  %v991_v28 = vld [vmem:[%s3096_s1 + $0x100] sm:$0xff] }
 0xd17   :  { %v1280_v20 = vpop.xlane.xlu0 %1279 }
 0xd18   :  { %2542 = vpow2.f32 %v1299_v29  ;;  %v1292_v32 = vsub.f32 %v1260_v2, %v1280_v20  ;;  %v992_v29 = vld [vmem:[%s3096_s1 + $0x108] sm:$0xff] }
 0xd19   :  { %v2430_v20 = vpack.c.bf16 %v992_v29, %v991_v28 }
 0xd1a   :  { %v2951_v33 = vpop.eup %2536  ;;  %v1305_v34 = vmul.f32 1.442695, %v1292_v32  ;;  %v993_v32 = vld [vmem:[%s3096_s1 + $0x110] sm:$0xff] }
 0xd1b   :  { %v2539_v35 = vpop.eup %2538  ;;  %v1277_v36 = vpop.xlane.xlu0 %1276  ;;  %v1314_v38 = vsel %vm411_vm12, %v2951_v33, 0.0  ;;  %2431 = vmatprep.subr.bf16.mxu0 %v2430_v20 }
 0xd1c   :  { %2544 = vpow2.f32 %v1305_v34  ;;  %v1291_v39 = vsub.f32 %v1259_v55, %v1277_v36  ;;  %1315 = vadd.xlane.f32.xlu1 %v1314_v38  ;;  %v1311_v40 = vsel %vm411_vm12, %v2539_v35, 0.0  ;;  %2433 = vmatpush3.bf16.msra.mxu0 %v2430_v20 }
 0xd1d   :  { %1312 = vadd.xlane.f32.xlu0 %v1311_v40 }
 0xd1e   :  { %v2541_v41 = vpop.eup %2540  ;;  %v1303_v42 = vmul.f32 1.442695, %v1291_v39 }
 0xd1f   :  { %v1283_v37 = vpop.xlane.xlu0 %1282  ;;  %v1320_v43 = vsel %vm411_vm12, %v2541_v41, 0.0 }
 0xd20   :  { %2546 = vpow2.f32 %v1303_v42  ;;  %v1293_v44 = vsub.f32 %v1261_v61, %v1283_v37  ;;  %1321 = vadd.xlane.f32.xlu1 %v1320_v43 }
 0xd22   :  { %v2543_v45 = vpop.eup %2542  ;;  %v1307_v18 = vmul.f32 1.442695, %v1293_v44 }
 0xd23   :  { %v1286_v19 = vpop.xlane.xlu0 %1285  ;;  %v1317_v46 = vsel %vm411_vm12, %v2543_v45, 0.0 }
 0xd24   :  { %2548 = vpow2.f32 %v1307_v18  ;;  %v1294_v48 = vsub.f32 %v1262_v9, %v1286_v19  ;;  %1318 = vadd.xlane.f32.xlu0 %v1317_v46 }
 0xd26   :  { %v2545_v49 = vpop.eup %2544  ;;  %v1309_v51 = vmul.f32 1.442695, %v1294_v48 }
 0xd27   :  { %v1326_v52 = vsel %vm411_vm12, %v2545_v49, 0.0 }
 0xd28   :  { %2550 = vpow2.f32 %v1309_v51  ;;  %1327 = vadd.xlane.f32.xlu1 %v1326_v52 }
 0xd2a   :  { %v2547_v53 = vpop.eup %2546 }
 0xd2b   :  { %v1323_v54 = vsel %vm411_vm12, %v2547_v53, 0.0 }
 0xd2c   :  { %1324 = vadd.xlane.f32.xlu0 %v1323_v54 }
 0xd2e   :  { %v2549_v56 = vpop.eup %2548 }
 0xd2f   :  { %v1329_v57 = vsel %vm411_vm12, %v2549_v56, 0.0 }
 0xd30   :  { %1330 = vadd.xlane.f32.xlu0 %v1329_v57 }
 0xd32   :  { %v2551_v58 = vpop.eup %2550 }
 0xd33   :  { %v1332_v59 = vsel %vm411_vm12, %v2551_v58, 0.0 }
 0xd34   :  { %1333 = vadd.xlane.f32.xlu1 %v1332_v59 }
 0xd46   :  { %2492 = vrot.lane.b32.xlu0 %v2911_v31, %s2610_s0 }
 0xda9   :  { %v1316_v50 = vpop.xlane.xlu1 %1315 }
 0xdaa   :  { %v1313_v60 = vpop.xlane.xlu0 %1312 }
 0xdab   :  { %2552 = vrcp.f32 %v1313_v60 }
 0xdac   :  { %2554 = vrcp.f32 %v1316_v50 }
 0xdad   :  { %v1322_v1 = vpop.xlane.xlu1 %1321 }
 0xdb1   :  { %v1319_v47 = vpop.xlane.xlu0 %1318 }
 0xdb2   :  { %2556 = vrcp.f32 %v1319_v47 }
 0xdb3   :  { %2558 = vrcp.f32 %v1322_v1 }
 0xdb5   :  { %v2553_v62 = vpop.eup %2552  ;;  %v1328_v3 = vpop.xlane.xlu1 %1327 }
 0xdb6   :  { %v1343_v63 = vmul.f32 %v2553_v62, %v2539_v35  ;;  %v2555_v61 = vpop.eup %2554 }
 0xdb7   :  { %v1344_v9 = vmul.f32 %v2555_v61, %v2951_v33  ;;  %v994_v33 = vld [vmem:[%s3096_s1 + $0x118] sm:$0xff]  ;;  %v997_v61 = vld [vmem:[%s3096_s1 + $0x130] sm:$0xff] }
 0xdb8   :  { %2290 = vmatprep.mubr.msk.f32.mxu1 %vm411_vm12, %v1343_v63  ;;  %v2434_v34 = vpack.c.bf16 %v994_v33, %v993_v32 }
 0xdb9   :  { %v1325_v0 = vpop.xlane.xlu0 %1324 }
 0xdba   :  { %2560 = vrcp.f32 %v1325_v0  ;;  %2435 = vmatprep.subr.bf16.mxu0 %v2434_v34 }
 0xdbb   :  { %2562 = vrcp.f32 %v1328_v3  ;;  %2437 = vmatpush3.bf16.msra.mxu0 %v2434_v34  ;;  %v2043_v34 = vld [vmem:[%s3097_s2 + $0xd] ss:$0 sm:$0xff] }
 0xdbc   :  { %v2557_v8 = vpop.eup %2556 }
 0xdbd   :  { %v1331_v2 = vpop.xlane.xlu0 %1330  ;;  %v2559_v4 = vpop.eup %2558  ;;  %v1345_v11 = vmul.f32 %v2557_v8, %v2543_v45  ;;  %v998_v8 = vld [vmem:[%s3096_s1 + $0x138] sm:$0xff] }
 0xdbe   :  { %2564 = vrcp.f32 %v1331_v2  ;;  %v1346_v13 = vmul.f32 %v2559_v4, %v2541_v41  ;;  %v999_v4 = vld [vmem:[%s3096_s1 + $0x140] sm:$0xff] }
 0xdc1   :  { %v2493_v5 = vpop.permute.xlu0 %2492  ;;  %v1334_v31 = vpop.xlane.xlu1 %1333 }
 0xdc2   :  { %v2495_v55 = vunpack.i.h.bf16 %v2493_v5  ;;  %v2494_v6 = vunpack.i.l.bf16 %v2493_v5  ;;  %2566 = vrcp.f32 %v1334_v31  ;;  %v996_v31 = vld [vmem:[%s3096_s1 + $0x128] sm:$0xff] }
 0xdc4   :  { %v2426_v7 = vpack.c.bf16 %v2495_v55, %v2494_v6  ;;  %v2561_v12 = vpop.eup %2560 }
 0xdc5   :  { %v2563_v15 = vpop.eup %2562  ;;  %v1347_v10 = vmul.f32 %v2561_v12, %v2547_v53  ;;  %v1001_v12 = vld [vmem:[%s3096_s1 + $0x150] sm:$0xff] }
 0xdc6   :  { %2427 = vmatprep.subr.bf16.mxu1 %v2426_v7  ;;  %v1348_v22 = vmul.f32 %v2563_v15, %v2545_v49  ;;  %v1002_v15 = vld [vmem:[%s3096_s1 + $0x158] sm:$0xff] }
 0xdc7   :  { %2429 = vmatpush3.bf16.msra.mxu1 %v2426_v7 }
 0xdc8   :  { %v2565_v17 = vpop.eup %2564 }
 0xdc9   :  { %v1349_v14 = vmul.f32 %v2565_v17, %v2549_v56  ;;  %v1003_v17 = vld [vmem:[%s3096_s1 + $0x160] sm:$0xff] }
 0xdca   :  { %2291 = vmatmul.mubr.msk.f32.vlgmr.msra.gmra.mrb[14].mxu1 %vm411_vm12, %v1344_v9  ;;  %v2442_v9 = vpack.c.bf16 %v998_v8, %v997_v61 }
 0xdcb   :  { %2293 = vmatprep.mubr.msk.f32.mxu1 %vm411_vm12, %v1345_v11  ;;  %v1000_v11 = vld [vmem:[%s3096_s1 + $0x148] sm:$0xff] }
 0xdcc   :  { %v2567_v26 = vpop.eup %2566 }
 0xdcd   :  { %v1350_v27 = vmul.f32 %v2567_v26, %v2551_v58 }
 0xdce   :  { %2294 = vmatmul.mubr.msk.f32.gmra.mrb[16].mxu1 %vm411_vm12, %v1346_v13  ;;  %v2446_v13 = vpack.c.bf16 %v1000_v11, %v999_v4 }
 0xdcf   :  { %2296 = vmatprep.mubr.msk.f32.mxu1 %vm411_vm12, %v1347_v10  ;;  %v2450_v10 = vpack.c.bf16 %v1002_v15, %v1001_v12 }
 0xdd0   :  { %2447 = vmatprep.subr.bf16.mxu0 %v2446_v13 }
 0xdd2   :  { %2297 = vmatmul.mubr.msk.f32.gmra.mrb[18].mxu1 %vm411_vm12, %v1348_v22  ;;  %v1004_v22 = vld [vmem:[%s3096_s1 + $0x168] sm:$0xff] }
 0xdd3   :  { %2299 = vmatprep.mubr.msk.f32.mxu1 %vm411_vm12, %v1349_v14  ;;  %v2454_v26 = vpack.c.bf16 %v1004_v22, %v1003_v17 }
 0xdd6   :  { %2300 = vmatmul.mubr.msk.f32.gmra.mrb[20].mxu1 %vm411_vm12, %v1350_v27 }
 0xe9d   :  { %v2292_v35 = vpop.f32.mrb[14].mxu1 }
 0xe9e   :  { %v1447_v36 = vpop.f32.mrb[15].mxu1  ;;  %v1487_v39 = vmul.f32 %v2292_v35, %v2689_v30 }
 0xe9f   :  { %v1486_v42 = vmul.f32 %v2689_v30, %v1447_v36  ;;  %v2044_v36 = vld [vmem:[%s3097_s2 + $0xe] ss:$0 sm:$0xff] }
 0xea1   :  { %v2295_v38 = vpop.f32.mrb[16].mxu1 }
 0xea2   :  { %v1489_v40 = vmul.f32 %v2295_v38, %v2680_v23  ;;  %v1457_v41 = vpop.f32.mrb[17].mxu1 }
 0xea3   :  { %v1488_v37 = vmul.f32 %v2680_v23, %v1457_v41  ;;  %v2040_v23 = vld [vmem:[%s3097_s2 + $0xa] ss:$0 sm:$0xff] }
 0xea4   :  { %v1491_v43 = vadd.f32 %v1489_v40, %v1487_v39 }
 0xea5   :  { %v1490_v44 = vadd.f32 %v1488_v37, %v1486_v42  ;;  %v2298_v45 = vpop.f32.mrb[18].mxu1 }
 0xea6   :  { %v1493_v18 = vmul.f32 %v2298_v45, %v2682_v24  ;;  %v1467_v19 = vpop.f32.mrb[19].mxu1 }
 0xea7   :  { %v1492_v46 = vmul.f32 %v2682_v24, %v1467_v19 }
 0xea8   :  { %v1495_v48 = vadd.f32 %v1493_v18, %v1491_v43  ;;  %v1005_v43 = vld [vmem:[%s3096_s1 + $0x170] sm:$0xff]  ;;  %v2045_v18 = vld [vmem:[%s3097_s2 + $0xb] ss:$0 sm:$0xff] }
 0xea9   :  { %v1494_v49 = vadd.f32 %v1492_v46, %v1490_v44  ;;  %v2301_v51 = vpop.f32.mrb[20].mxu1  ;;  %v1006_v44 = vld [vmem:[%s3096_s1 + $0x178] sm:$0xff] }
 0xeaa   :  { %v1497_v52 = vmul.f32 %v2301_v51, %v2684_v25  ;;  %v1477_v53 = vpop.f32.mrb[21].mxu1  ;;  %v2458_v45 = vpack.c.bf16 %v1006_v44, %v1005_v43 }
 0xeab   :  { %v1496_v54 = vmul.f32 %v2684_v25, %v1477_v53  ;;  %v2048_v53 = vld [vmem:[%s3097_s2 + $0xc] ss:$0 sm:$0xff] }
 0xeac   :  { %v1499_v56 = vadd.f32 %v1497_v52, %v1495_v48 }
 0xead   :  { %v1498_v30 = vadd.f32 %v1496_v54, %v1494_v49 }
 0xeaf   :  { %2310 = vmatprep.mubr.msk.f32.mxu0 %vm31_vm0, %v1498_v30 }
 0xeb0   :  { %2311 = vmatmul.mubr.msk.f32.vlgmr.msra.gmra.mrb[22].mxu0 %vm31_vm0, %v1499_v56 }
 0xeb1   :  { %2449 = vmatpush3.bf16.msra.mxu0 %v2446_v13  ;;  %v2051_v13 = vld [vmem:[%s3097_s2 + $0xf] ss:$0 sm:$0xff] }
 0xeb2   :  { %2451 = vmatprep.subr.bf16.mxu0 %v2450_v10 }
 0xeb5   :  { %2453 = vmatpush3.bf16.msra.mxu0 %v2450_v10  ;;  %v2052_v10 = vld [vmem:[%s3097_s2 + $0x10] ss:$0 sm:$0xff] }
 0xeb6   :  { %2455 = vmatprep.subr.bf16.mxu0 %v2454_v26 }
 0xeb9   :  { %2457 = vmatpush3.bf16.msra.mxu0 %v2454_v26 }
 0xeba   :  { %2459 = vmatprep.subr.bf16.mxu0 %v2458_v45 }
 0xebd   :  { %2461 = vmatpush3.bf16.msra.mxu0 %v2458_v45 }
 0xf83   :  { %v2312_v57 = vpop.f32.mrb[22].mxu0 }
 0xf84   :  { %v1576_v24 = vpop.f32.mrb[23].mxu0  ;;  %v1582_v58 = vadd.f32 %v2312_v57, %v2040_v23 }
 0xf85   :  { %v1577_v59 = vadd.f32 %v2040_v23, %v1576_v24 }
 0xf86   :  { %v1586_v25 = vadd.f32 %v1582_v58, %v2904_v21  ;;  %v995_v21 = vld [vmem:[%s3096_s1 + $0x120] sm:$0xff] }
 0xf87   :  { %v1585_v60 = vadd.f32 %v1577_v59, %v2900_v16  ;;  %v2438_v7 = vpack.c.bf16 %v996_v31, %v995_v21  ;;  %v1840_v21 = vld [vmem:[%s3096_s1 + $0x38] sm:$0xff] }
 0xf88   :  { %v1590_v47 = vsel %vm31_vm0, %v1586_v25, 0.0 }
 0xf89   :  { %v1587_v62 = vsel %vm31_vm0, %v1585_v60, 0.0  ;;  %2439 = vmatprep.subr.bf16.mxu1 %v2438_v7 }
 0xf8a   :  { %1588 = vadd.xlane.f32.xlu1 %v1587_v62  ;;  %2441 = vmatpush3.bf16.msra.mxu1 %v2438_v7 }
 0xf8b   :  { %2443 = vmatprep.subr.bf16.mxu1 %v2442_v9 }
 0xf8e   :  { %1591 = vadd.xlane.f32.xlu1 %v1590_v47  ;;  %2445 = vmatpush3.bf16.msra.mxu1 %v2442_v9 }
0x1017   :  { %v1589_v50 = vpop.xlane.xlu1 %1588 }
0x1018   :  { %v1593_v63 = vmul.f32 0.03125, %v1589_v50 }
0x101a   :  { %v1595_v0 = vsub.f32 %v1585_v60, %v1593_v63 }
0x101b   :  { %v1592_v1 = vpop.xlane.xlu1 %1591 }
0x101c   :  { %v1594_v2 = vmul.f32 0.03125, %v1592_v1  ;;  %v1597_v3 = vmul.f32 %v1595_v0, %v1595_v0 }
0x101e   :  { %v1596_v5 = vsub.f32 %v1586_v25, %v1594_v2  ;;  %v1599_v55 = vsel %vm31_vm0, %v1597_v3, 0.0 }
0x101f   :  { %1600 = vadd.xlane.f32.xlu1 %v1599_v55  ;;  %v1838_v55 = vld [vmem:[%s3096_s1 + $0x28] sm:$0xff] }
0x1020   :  { %v1598_v6 = vmul.f32 %v1596_v5, %v1596_v5 }
0x1022   :  { %v1602_v16 = vsel %vm31_vm0, %v1598_v6, 0.0 }
0x1023   :  { %1603 = vadd.xlane.f32.xlu1 %v1602_v16  ;;  %v1839_v16 = vld [vmem:[%s3096_s1 + $0x30] sm:$0xff] }
0x1024   :  { %v2466_v31 = vpack.c.bf16 %v1840_v21, %v1839_v16 }
0x10ac   :  { %v1601_v14 = vpop.xlane.xlu1 %1600 }
0x10ad   :  { %v1605_v27 = vmul.f32 0.03125, %v1601_v14 }
0x10af   :  { %v1607_v28 = vadd.f32 1e-05, %v1605_v27 }
0x10b0   :  { %v1604_v29 = vpop.xlane.xlu1 %1603 }
0x10b1   :  { %2568 = vrsqrt.f32 %v1607_v28  ;;  %v1606_v20 = vmul.f32 0.03125, %v1604_v29  ;;  %v2053_v29 = vld [vmem:[%s3097_s2] ss:$0 sm:$0xff]  ;;  %s2611_s2 = smov [#allocation2]  }
0x10b2   :  { %s1968_s4 = sshll.u32 %s2611_s2, 4  ;;  %s1969_s4 = int_to_ptr.vmem [resolvable:$true] %s1968_s4 }
0x10b3   :  { %v1608_v32 = vadd.f32 1e-05, %v1606_v20  ;;  %s2584_s11 = scalar_lea.vmem %s1969_s4, 256  ;;  %p2589_p1 = scmp.lt.s32.totalorder %s1969_s4, %s1969_s4 }
0x10b4   :  { %p2585_p0 = scmp.ne.s32.totalorder %s1969_s4, %s2584_s11  ;;  %p2590_p2 = scmp.lt.s32.totalorder %s2584_s11, %s2584_s11 }
0x10b5   :  { %2570 = vrsqrt.f32 %v1608_v32 }
0x10b6   :  { %p2591_p3 = por %p2590_p2, %p2589_p1 }
0x10b8   :  { %p2592_p4 = pnand %p2591_p3, %p2585_p0 }
0x10bb   :  { %v2569_v33 = vpop.eup %2568 }
0x10bc   :  { %v1611_v35 = vmul.f32 %v2569_v33, %v1595_v0 }
0x10be   :  { %v1617_v38 = vmul.f32 %v2043_v34, %v1611_v35 }
0x10bf   :  { %v2571_v39 = vpop.eup %2570 }
0x10c0   :  { %v1612_v40 = vmul.f32 %v2571_v39, %v1596_v5  ;;  %v1623_v41 = vadd.f32 %v2044_v36, %v1617_v38  ;;  %v1837_v5 = vld [vmem:[%s3096_s1 + $0x20] sm:$0xff] }
0x10c1   :  { %v2462_v6 = vpack.c.bf16 %v1838_v55, %v1837_v5 }
0x10c2   :  { %v1618_v42 = vmul.f32 %v2043_v34, %v1612_v40  ;;  %2321 = vmatprep.mubr.msk.f32.mxu1 %vm31_vm0, %v1623_v41 }
0x10c3   :  { %2463 = vmatprep.subr.bf16.mxu1 %v2462_v6 }
0x10c4   :  { %v1624_v37 = vadd.f32 %v2044_v36, %v1618_v42 }
0x10c6   :  { %2322 = vmatmul.mubr.msk.f32.vlgmr.msra.gmra.mrb[22].mxu1 %vm31_vm0, %v1624_v37 }
0x10c7   :  { %2465 = vmatpush3.bf16.msra.mxu1 %v2462_v6 }
0x10c8   :  { %2467 = vmatprep.subr.bf16.mxu1 %v2466_v31 }
0x10cb   :  { %2469 = vmatpush3.bf16.msra.mxu1 %v2466_v31 }
0x1199   :  { %v2323_v19 = vpop.f32.mrb[22].mxu1 }
0x119a   :  { %v1707_v46 = vadd.f32 %v2323_v19, %v2045_v18  ;;  %v1701_v48 = vpop.f32.mrb[23].mxu1 }
0x119b   :  { %v1702_v49 = vadd.f32 %v2045_v18, %v1701_v48 }
0x119c   :  { %v1711_v52 = vmax.f32 %v1707_v46, 0.0 }
0x119d   :  { %v1710_v51 = vmax.f32 %v1702_v49, 0.0 }
0x119f   :  { %2340 = vmatprep.mubr.msk.f32.mxu0 %vm865_vm13, %v1710_v51 }
0x11a0   :  { %2341 = vmatmul.mubr.msk.f32.vlgmr.msra.gmra.mrb[24].mxu0 %vm865_vm13, %v1711_v52 }
0x1273   :  { %v2342_v54 = vpop.f32.mrb[24].mxu0 }
0x1274   :  { %v1788_v56 = vpop.f32.mrb[25].mxu0  ;;  %v1794_v30 = vadd.f32 %v2342_v54, %v2048_v53 }
0x1275   :  { %v1789_v23 = vadd.f32 %v2048_v53, %v1788_v56 }
0x1276   :  { %v1798_v58 = vadd.f32 %v1794_v30, %v1624_v37 }
0x1277   :  { %v1797_v57 = vadd.f32 %v1789_v23, %v1623_v41 }
0x1278   :  { %v1802_v59 = vsel %vm31_vm0, %v1798_v58, 0.0 }
0x1279   :  { %v1799_v24 = vsel %vm31_vm0, %v1797_v57, 0.0 }
0x127a   :  { %1800 = vadd.xlane.f32.xlu1 %v1799_v24 }
0x127e   :  { %1803 = vadd.xlane.f32.xlu1 %v1802_v59 }
0x1307   :  { %v1801_v60 = vpop.xlane.xlu1 %1800 }
0x1308   :  { %v1805_v62 = vmul.f32 0.03125, %v1801_v60 }
0x130a   :  { %v1807_v25 = vsub.f32 %v1797_v57, %v1805_v62 }
0x130b   :  { %v1804_v47 = vpop.xlane.xlu1 %1803 }
0x130c   :  { %v1806_v50 = vmul.f32 0.03125, %v1804_v47  ;;  %v1809_v63 = vmul.f32 %v1807_v25, %v1807_v25 }
0x130e   :  { %v1808_v0 = vsub.f32 %v1798_v58, %v1806_v50  ;;  %v1811_v1 = vsel %vm31_vm0, %v1809_v63, 0.0 }
0x130f   :  { %1812 = vadd.xlane.f32.xlu0 %v1811_v1 }
0x1310   :  { %v1810_v2 = vmul.f32 %v1808_v0, %v1808_v0 }
0x1312   :  { %v1814_v3 = vsel %vm31_vm0, %v1810_v2, 0.0 }
0x1313   :  { %1815 = vadd.xlane.f32.xlu1 %v1814_v3 }
0x139c   :  { %v1813_v7 = vpop.xlane.xlu0 %1812 }
0x139d   :  { %v1817_v61 = vmul.f32 0.03125, %v1813_v7 }
0x139f   :  { %v1819_v8 = vadd.f32 1e-05, %v1817_v61 }
0x13a0   :  { %v1816_v9 = vpop.xlane.xlu1 %1815 }
0x13a1   :  { %2572 = vrsqrt.f32 %v1819_v8  ;;  %v1818_v4 = vmul.f32 0.03125, %v1816_v9 }
0x13a3   :  { %v1820_v11 = vadd.f32 1e-05, %v1818_v4 }
0x13a5   :  { %2574 = vrsqrt.f32 %v1820_v11 }
0x13ab   :  { %v2573_v12 = vpop.eup %2572 }
0x13ac   :  { %v1823_v15 = vmul.f32 %v2573_v12, %v1807_v25 }
0x13ae   :  { %v1829_v17 = vmul.f32 %v2051_v13, %v1823_v15 }
0x13af   :  { %v2575_v22 = vpop.eup %2574 }
0x13b0   :  { %v1824_v26 = vmul.f32 %v2575_v22, %v1808_v0  ;;  %v1835_v14 = vadd.f32 %v2052_v10, %v1829_v17 }
0x13b2   :  { %v1830_v27 = vmul.f32 %v2051_v13, %v1824_v26  ;;  %2351 = vmatprep.mubr.msk.f32.mxu1 %vm31_vm0, %v1835_v14 }
0x13b4   :  { %v1836_v28 = vadd.f32 %v2052_v10, %v1830_v27 }
0x13b6   :  { %2352 = vmatmul.mubr.msk.f32.vlgmr.msra.gmra.mrb[24].mxu1 %vm31_vm0, %v1836_v28 }
0x1489   :  { %v2353_v20 = vpop.f32.mrb[24].mxu1 }
0x148a   :  { %v1924_v32 = vadd.f32 %v2353_v20, %v2053_v29  ;;  %v1918_v33 = vpop.f32.mrb[25].mxu1 }
0x148b   :  { %v1919_v34 = vadd.f32 %v2053_v29, %v1918_v33 }
0x148c   :  { %v1933_v35 = vrot.slane %v1924_v32, 4 }
0x148d   :  { %v1927_v36 = vrot.slane %v1919_v34, 4 }
0x148e   :  { %v1934_v38 = vmax.f32 %v1924_v32, %v1933_v35 }
0x148f   :  { %v1928_v39 = vmax.f32 %v1919_v34, %v1927_v36 }
0x1490   :  { %v1935_v40 = vrot.slane %v1934_v38, 2 }
0x1491   :  { %v1929_v41 = vrot.slane %v1928_v39, 2 }
0x1492   :  { %v1936_v42 = vmax.f32 %v1934_v38, %v1935_v40 }
0x1493   :  { %v1930_v37 = vmax.f32 %v1928_v39, %v1929_v41 }
0x1494   :  { %v1937_v43 = vrot.slane %v1936_v42, 1 }
0x1495   :  { %v1931_v44 = vrot.slane %v1930_v37, 1 }
0x1496   :  { %v1938_v45 = vmax.f32 %v1936_v42, %v1937_v43 }
0x1497   :  { %v1932_v18 = vmax.f32 %v1930_v37, %v1931_v44 }
0x1498   :  { %v1940_v19 = vsub.f32 %v1924_v32, %v1938_v45 }
0x1499   :  { %v1939_v46 = vsub.f32 %v1919_v34, %v1932_v18 }
0x149a   :  { %v1943_v48 = vmul.f32 1.442695, %v1940_v19 }
0x149b   :  { %v1941_v49 = vmul.f32 1.442695, %v1939_v46 }
0x149c   :  { %2576 = vpow2.f32 %v1943_v48 }
0x149d   :  { %2578 = vpow2.f32 %v1941_v49 }
0x14a6   :  { %v2577_v51 = vpop.eup %2576 }
0x14a7   :  { %v2579_v52 = vpop.eup %2578  ;;  %v1951_v53 = vrot.slane %v2577_v51, 4 }
0x14a8   :  { %v1945_v54 = vrot.slane %v2579_v52, 4 }
0x14a9   :  { %v1952_v56 = vadd.f32 %v2577_v51, %v1951_v53 }
0x14aa   :  { %v1946_v30 = vadd.f32 %v2579_v52, %v1945_v54 }
0x14ab   :  { %v1953_v23 = vrot.slane %v1952_v56, 2 }
0x14ac   :  { %v1947_v57 = vrot.slane %v1946_v30, 2 }
0x14ad   :  { %v1954_v24 = vadd.f32 %v1953_v23, %v1952_v56 }
0x14ae   :  { %v1948_v58 = vadd.f32 %v1947_v57, %v1946_v30 }
0x14af   :  { %v1955_v59 = vrot.slane %v1954_v24, 1 }
0x14b0   :  { %v1949_v60 = vrot.slane %v1948_v58, 1 }
0x14b1   :  { %v1956_v62 = vadd.f32 %v1955_v59, %v1954_v24 }
0x14b2   :  { %v1950_v25 = vadd.f32 %v1949_v60, %v1948_v58 }
0x14b3   :  { %2580 = vrcp.f32 %v1956_v62 }
0x14b4   :  { %2582 = vrcp.f32 %v1950_v25 }
0x14bd   :  { %v2581_v47 = vpop.eup %2580 }
0x14be   :  { %v2583_v50 = vpop.eup %2582  ;;  %v1960_v63 = vmul.f32 %v2581_v47, %v2577_v51 }
0x14bf   :  { %v1958_v0 = vmul.f32 %v2583_v50, %v2579_v52 }
0x14c0   :  { %1962 = vst [vmem:[#allocation2 + $0x8] sm:$0xff] %v1960_v63 }
0x14c1   :  { %1961 = vst [vmem:[#allocation2] sm:$0xff] %v1958_v0 }
0x14c2   :  { %2595 = shalt.err (!%p2592_p4)
}
0x14c3   :  { %s2596_s6 = scalar_lea.hbm %s3098_s3, 256 }
0x14c4   :  { %p2597_p5 = scmp.ne.s32.totalorder %s3098_s3, %s2596_s6  ;;  %p2600_p6 = scmp.lt.u32.totalorder %s2596_s6, %s3098_s3 }
0x14c6   :  { %p2602_p7 = pnand %p2600_p6, %p2597_p5 }
0x14c8   :  { %2605 = shalt.err (!%p2602_p7)
}
0x14c9   :  { %s2612_s12 = smov 128   ;;  %s2613_s13 = smov 8  }
0x14ca   :  { %1974 = dma.vmem_to_hbm [thread:$0]  %s1969_s4, 256, %s3098_s3, [#allocation3], %s2612_s12, %s2612_s12, %s2613_s13  }
0x14cb   :  { %2606 = dma.done.wait [#allocation3], 256  }
0x14cc   :  { %2607 = vsyncadd [#allocation3], 4294967040 }
0x14cd   :  { %1978 = vsyncpa [#allocation3], 1 }

</bundles_post_ra>
